<compile_context>
chip_gen: v7x
topology: tpu7x:2x2x1
jax: 0.10.0
libtpu: 0.0.40
codegen_flags: <defaults>
</compile_context>

<pallas_src>
import functools

import jax
import jax.numpy as jnp
from jax import lax
from jax.experimental import pallas as pl
from jax.experimental.pallas import tpu as pltpu

G = 9.8
_EPSILON = 1e-8
_MIN_FLOW = 1e-7
_RAIN_SCALE = 1.0 / (1000.0 * 60.0 * 60.0)


def _round_up(x, m):
    return ((x + m - 1) // m) * m


# ---------------------------------------------------------------------------
# In-kernel shift helpers (XLU rolls; the wrapped row/col is fixed by callers).
# ---------------------------------------------------------------------------
def _take_col_right(x):
    """out[i, j] = x[i, j + 1]; last column wraps (callers mask it)."""
    return pltpu.roll(x, x.shape[1] - 1, 1)


def _take_col_left(x):
    """out[i, j] = x[i, j - 1]; column 0 wraps (callers mask it)."""
    return pltpu.roll(x, 1, 1)


def _take_row_below(x):
    """out[i, :] = x[i + 1, :]; last row wraps (callers replace it with halo)."""
    return pltpu.roll(x, x.shape[0] - 1, 0)


def _take_row_above(x):
    """out[i, :] = x[i - 1, :]; row 0 wraps (callers replace it with halo)."""
    return pltpu.roll(x, 1, 0)


# ---------------------------------------------------------------------------
# Kernel 1: momentum update -> q_x_next, q_y_next (full lane-dense (TH, W_pad)).
#   halos: first row of the tile below (h, z, q_x) and last row of the tile
#   above (q_y), each an (8, W_pad) block of the same HBM array.
# ---------------------------------------------------------------------------
def _flux_kernel(dt_ref, h_ref, z_ref, qx_ref, qy_ref, man_ref,
                 h_blo_ref, z_blo_ref, qx_blo_ref, qy_abv_ref,
                 qxn_ref, qyn_ref, *, inv_dx, n_rows, n_cols, tile_rows,
                 approx_recip):
    i = pl.program_id(0)
    dt = dt_ref[0]
    g_dt = G * dt                      # hoisted scalar product

    h = h_ref[...]
    z = z_ref[...]
    qx = qx_ref[...]                   # zero in columns >= n_cols - 1
    qy = qy_ref[...]                   # zero in rows    >= n_rows - 1
    man = man_ref[...]
    man2 = man * man

    shape = h.shape
    row = lax.broadcasted_iota(jnp.int32, shape, 0)
    col = lax.broadcasted_iota(jnp.int32, shape, 1)
    last_local_row = tile_rows - 1
    is_first_tile = i == 0

    wl = h + z                         # water level

    # ----------------- x momentum (fluxes on x interfaces j|j+1) ------------
    wl_e = _take_col_right(wl)         # value one cell east (j+1)
    z_e = _take_col_right(z)
    cf_x = jnp.maximum(jnp.maximum(wl_e, wl) - jnp.maximum(z_e, z), _MIN_FLOW)
    slope_x = (wl_e - wl) * inv_dx

    # 2x2 zero-padded average of q_y at x interfaces (transverse q_norm term).
    qy_abv_row = jnp.where(is_first_tile, 0.0, qy_abv_ref[...][7:8, :])
    qy_north = jnp.where(row == 0, qy_abv_row, _take_row_above(qy))
    t = qy + qy_north
    y_avg = 0.25 * (t + _take_col_right(t))
    q_norm_x = jnp.sqrt(qx * qx + y_avg * y_avg + _EPSILON)

    inv_cf_x_73 = jnp.exp(jnp.log(cf_x) * (-7.0 / 3.0))   # 1 / cf_x**(7/3)
    den_x = 1.0 + g_dt * man2 * q_norm_x * inv_cf_x_73
    num_x = qx - g_dt * cf_x * slope_x
    if approx_recip:
        qxn = num_x * pl.reciprocal(den_x, approx=True)
    else:
        qxn = num_x / den_x
    # interface W-1 does not exist; keep it 0 so the mass update sees a
    # zero-flux boundary and the wrapper slice is exact.
    qxn = jnp.where(col >= n_cols - 1, 0.0, qxn)

    # ----------------- y momentum (fluxes on y interfaces i|i+1) ------------
    h_blo = h_blo_ref[...][0:1, :]
    z_blo = z_blo_ref[...][0:1, :]
    wl_blo = h_blo + z_blo
    wl_s = jnp.where(row == last_local_row, wl_blo, _take_row_below(wl))
    z_s = jnp.where(row == last_local_row, z_blo, _take_row_below(z))
    cf_y = jnp.maximum(jnp.maximum(wl_s, wl) - jnp.maximum(z_s, z), _MIN_FLOW)
    slope_y = (wl_s - wl) * inv_dx

    qx_blo = qx_blo_ref[...][0:1, :]
    qx_south = jnp.where(row == last_local_row, qx_blo, _take_row_below(qx))
    s = qx + qx_south
    x_avg = 0.25 * (s + jnp.where(col == 0, 0.0, _take_col_left(s)))
    q_norm_y = jnp.sqrt(qy * qy + x_avg * x_avg + _EPSILON)

    inv_cf_y_73 = jnp.exp(jnp.log(cf_y) * (-7.0 / 3.0))
    den_y = 1.0 + g_dt * man2 * q_norm_y * inv_cf_y_73
    num_y = qy - g_dt * cf_y * slope_y
    if approx_recip:
        qyn = num_y * pl.reciprocal(den_y, approx=True)
    else:
        qyn = num_y / den_y
    g_row = i * tile_rows + row
    qyn = jnp.where(g_row >= n_rows - 1, 0.0, qyn)   # interface H-1 doesn't exist

    qxn_ref[...] = qxn
    qyn_ref[...] = qyn


# ---------------------------------------------------------------------------
# Kernel 2: mass update -> h_next.  Needs only the last row of the tile above
# of q_y_next (8-row halo block), so the row grid stays fully parallel.
# ---------------------------------------------------------------------------
def _mass_kernel(dt_ref, h0_ref, rain_ref, qxn_ref, qyn_ref, qyn_abv_ref,
                 h_next_ref, *, inv_dx):
    i = pl.program_id(0)
    dt = dt_ref[0]
    dt_inv_dx = dt * inv_dx            # hoisted scalar product

    qxn = qxn_ref[...]
    qyn = qyn_ref[...]
    shape = qxn.shape
    row = lax.broadcasted_iota(jnp.int32, shape, 0)
    col = lax.broadcasted_iota(jnp.int32, shape, 1)

    # flux divergence with zero-flux domain boundaries (== F.pad + derivative)
    qxn_w = jnp.where(col == 0, 0.0, _take_col_left(qxn))
    qyn_abv_row = jnp.where(i == 0, 0.0, qyn_abv_ref[...][7:8, :])
    qyn_n = jnp.where(row == 0, qyn_abv_row, _take_row_above(qyn))

    h_src = h0_ref[...] + dt * (rain_ref[...] * _RAIN_SCALE)
    h_next_ref[...] = h_src + dt_inv_dx * ((qxn_w - qxn) + (qyn_n - qyn))


# ---------------------------------------------------------------------------
# Wrapper
# ---------------------------------------------------------------------------
def saint_venant_flux_step(z_n, h_n, q_x_n, q_y_n, dt, rain, manning, h_n0,
                           *, spatial_delta=1.0, theta=1.0, tile_rows=None,
                           approx_recip=True):
    """One step of SaintVenantFlux.forward (first call, default theta=1)."""
    # TODO(synk): theta != 1 path (_q_centered 3-tap replicate-padded conv) not
    # implemented; with the module default theta=1 it is the identity.
    assert theta == 1.0, "only theta == 1 supported"
    # dt == 0 early-out only honoured for concrete Python numbers (the PyTorch
    # module also branches at Python level); use lax.cond outside for traced dt.
    if isinstance(dt, (int, float)) and dt == 0:
        return h_n, q_x_n, q_y_n

    B, C, H, W = z_n.shape
    assert B == 1 and C == 1, "kernel handles a single (B=1, C=1) grid"
    f32 = jnp.float32
    inv_dx = float(1.0 / spatial_delta)

    def squeeze(a):
        return a.reshape(a.shape[-2], a.shape[-1]).astype(f32)

    z2, h2 = squeeze(z_n), squeeze(h_n)
    qx2, qy2 = squeeze(q_x_n), squeeze(q_y_n)        # (H, W-1), (H-1, W)
    rain2, man2, h02 = squeeze(rain), squeeze(manning), squeeze(h_n0)

    # Lane-dense padded layout: W_pad multiple of 128, H_pad multiple of the
    # tile height.  q_x / q_y zero-pad exactly fills the missing column / row.
    W_pad = _round_up(W, 128)
    if tile_rows is None:
        # ~8 double-buffered (TH, W_pad) f32 blocks live per grid step; keep the
        # working set small enough for v5e's 16 MiB default / v7x's 64 MiB VMEM.
        budget = 10 * 1024 * 1024
        th = budget // (2 * 8 * W_pad * 4)
        th = max(8, min(512, (th // 8) * 8))
    else:
        th = _round_up(max(int(tile_rows), 8), 8)
    TH = min(th, _round_up(H, 8))
    H_pad = _round_up(H, TH)
    num_tiles = H_pad // TH
    nb = TH // 8                       # 8-row blocks per tile (halo indexing)
    n_row_blocks = H_pad // 8

    def pad2(a):
        return jnp.pad(a, ((0, H_pad - a.shape[0]), (0, W_pad - a.shape[1])))

    # TODO(synk): in a time-stepping driver keep the state in this padded
    # (H_pad, W_pad) layout across steps and donate/alias the buffers so the
    # pads/slices (and their HBM traffic) are not redone every step.
    h_p, z_p = pad2(h2), pad2(z2)
    qx_p, qy_p = pad2(qx2), pad2(qy2)
    rain_p, man_p, h0_p = pad2(rain2), pad2(man2), pad2(h02)
    dt_arr = jnp.asarray([dt], dtype=f32)

    main = pl.BlockSpec((TH, W_pad), lambda i: (i, 0))
    halo_below = pl.BlockSpec(
        (8, W_pad), lambda i: (jnp.minimum((i + 1) * nb, n_row_blocks - 1), 0))
    halo_above = pl.BlockSpec(
        (8, W_pad), lambda i: (jnp.maximum(i * nb - 1, 0), 0))
    smem = pl.BlockSpec(memory_space=pltpu.MemorySpace.SMEM)

    compiler_params = pltpu.CompilerParams(
        dimension_semantics=("parallel",),           # row tiles are independent
        vmem_limit_bytes=48 * 1024 * 1024)

    flux_kernel = functools.partial(
        _flux_kernel, inv_dx=inv_dx, n_rows=H, n_cols=W, tile_rows=TH,
        approx_recip=approx_recip)
    qxn_p, qyn_p = pl.pallas_call(
        flux_kernel,
        grid=(num_tiles,),
        out_shape=(jax.ShapeDtypeStruct((H_pad, W_pad), f32),
                   jax.ShapeDtypeStruct((H_pad, W_pad), f32)),
        in_specs=[smem, main, main, main, main, main,
                  halo_below, halo_below, halo_below, halo_above],
        out_specs=(main, main),
        compiler_params=compiler_params,
    )(dt_arr, h_p, z_p, qx_p, qy_p, man_p, h_p, z_p, qx_p, qy_p)

    mass_kernel = functools.partial(_mass_kernel, inv_dx=inv_dx)
    h_next_p = pl.pallas_call(
        mass_kernel,
        grid=(num_tiles,),
        out_shape=jax.ShapeDtypeStruct((H_pad, W_pad), f32),
        in_specs=[smem, main, main, main, main, halo_above],
        out_specs=main,
        compiler_params=compiler_params,
    )(dt_arr, h0_p, rain_p, qxn_p, qyn_p, qyn_p)

    expand = lambda a: a[None, None]
    return (expand(h_next_p[:H, :W]),
            expand(qxn_p[:H, :W - 1]),
            expand(qyn_p[:H - 1, :W]))


# ---------------------------------------------------------------------------
# Pure-JAX reference of the PyTorch forward (theta=1, init_source=True).
# ---------------------------------------------------------------------------
def _reference_step(z, h, qx, qy, dt, rain, man, h0, dx):
    wl = h + z
    cf_x = jnp.maximum(
        jnp.maximum(wl[:, 1:], wl[:, :-1]) - jnp.maximum(z[:, 1:], z[:, :-1]),
        _MIN_FLOW)
    cf_y = jnp.maximum(
        jnp.maximum(wl[1:, :], wl[:-1, :]) - jnp.maximum(z[1:, :], z[:-1, :]),
        _MIN_FLOW)
    slope_x = (wl[:, 1:] - wl[:, :-1]) / dx
    slope_y = (wl[1:, :] - wl[:-1, :]) / dx
    num_x = qx - G * dt * cf_x * slope_x
    num_y = qy - G * dt * cf_y * slope_y

    qy_pad = jnp.pad(qy, ((1, 1), (0, 0)))
    y_avg = 0.25 * (qy_pad[:-1, :-1] + qy_pad[:-1, 1:] +
                    qy_pad[1:, :-1] + qy_pad[1:, 1:])
    q_norm_x = jnp.sqrt(qx ** 2 + y_avg ** 2 + _EPSILON)
    qx_pad = jnp.pad(qx, ((0, 0), (1, 1)))
    x_avg = 0.25 * (qx_pad[:-1, :-1] + qx_pad[:-1, 1:] +
                    qx_pad[1:, :-1] + qx_pad[1:, 1:])
    q_norm_y = jnp.sqrt(qy ** 2 + x_avg ** 2 + _EPSILON)

    man_x = man[:, :-1]
    man_y = man[:-1, :]
    den_x = 1.0 + G * dt * man_x ** 2 * q_norm_x / cf_x ** (7.0 / 3.0)
    den_y = 1.0 + G * dt * man_y ** 2 * q_norm_y / cf_y ** (7.0 / 3.0)
    qxn = num_x / den_x
    qyn = num_y / den_y

    flux_x = jnp.pad(qxn, ((0, 0), (1, 1)))
    flux_y = jnp.pad(qyn, ((1, 1), (0, 0)))
    div_x = (flux_x[:, :-1] - flux_x[:, 1:]) / dx
    div_y = (flux_y[:-1, :] - flux_y[1:, :]) / dx
    h_src = h0 + dt * rain * _RAIN_SCALE
    h_next = h_src + dt * (div_x + div_y)
    return h_next, qxn, qyn


if __name__ == "__main__":
    key = jax.random.PRNGKey(0)
    ks = jax.random.split(key, 7)
    B, C, H, W = 1, 1, 48, 40

    z = jax.random.uniform(ks[0], (B, C, H, W), jnp.float32, 0.0, 1.0)
    h = jax.random.uniform(ks[1], (B, C, H, W), jnp.float32, 0.0, 2.0)
    qx = 0.1 * jax.random.normal(ks[2], (B, C, H, W - 1), jnp.float32)
    qy = 0.1 * jax.random.normal(ks[3], (B, C, H - 1, W), jnp.float32)
    rain = jax.random.uniform(ks[4], (B, C, H, W), jnp.float32, 0.0, 10.0)
    manning = (jnp.full((B, C, H, W), 0.03, jnp.float32) +
               0.005 * jax.random.uniform(ks[5], (B, C, H, W), jnp.float32))
    h0 = jax.random.uniform(ks[6], (B, C, H, W), jnp.float32, 0.0, 2.0)
    dt = 0.5

    ref = _reference_step(z[0, 0], h[0, 0], qx[0, 0], qy[0, 0], dt,
                          rain[0, 0], manning[0, 0], h0[0, 0], 1.0)
    ref = jax.block_until_ready(ref)

    # run once with a multi-tile row grid (exercises the halo path) and once
    # with the auto-sized single tile; both must match the reference.
    for tr in (16, None):
        h_next, qx_next, qy_next = saint_venant_flux_step(
            z, h, qx, qy, dt, rain, manning, h0,
            spatial_delta=1.0, theta=1.0, tile_rows=tr)
        jax.block_until_ready((h_next, qx_next, qy_next))

        assert h_next.shape == (B, C, H, W)
        assert qx_next.shape == (B, C, H, W - 1)
        assert qy_next.shape == (B, C, H - 1, W)
        assert h_next.dtype == jnp.float32

        rtol = 5e-3
        for name, got, want, atol in (("h_next", h_next, ref[0], 5e-2),
                                      ("q_x_next", qx_next, ref[1], 5e-3),
                                      ("q_y_next", qy_next, ref[2], 5e-3)):
            diff = jnp.abs(got[0, 0] - want)
            excess = float(jnp.max(diff - rtol * jnp.abs(want)))
            assert excess <= atol, f"{name} (tile_rows={tr}): excess={excess}"

    print("KERNEL_OK")
</pallas_src>

<mosaic_0001>
module attributes {stable_mosaic.version = 11 : i64} {
  func.func @_flux_kernel(%arg0: i32, %arg1: memref<1xf32, #tpu.memory_space<smem>>, %arg2: memref<16x128xf32, #tpu.memory_space<vmem>>, %arg3: memref<16x128xf32, #tpu.memory_space<vmem>>, %arg4: memref<16x128xf32, #tpu.memory_space<vmem>>, %arg5: memref<16x128xf32, #tpu.memory_space<vmem>>, %arg6: memref<16x128xf32, #tpu.memory_space<vmem>>, %arg7: memref<8x128xf32, #tpu.memory_space<vmem>>, %arg8: memref<8x128xf32, #tpu.memory_space<vmem>>, %arg9: memref<8x128xf32, #tpu.memory_space<vmem>>, %arg10: memref<8x128xf32, #tpu.memory_space<vmem>>, %arg11: memref<16x128xf32, #tpu.memory_space<vmem>>, %arg12: memref<16x128xf32, #tpu.memory_space<vmem>>) attributes {dimension_semantics = [#tpu.dimension_semantics<parallel>], iteration_bounds = array<i64: 3>, scalar_prefetch = 0 : i64, scratch_operands = 0 : i64, tpu.core_type = #tpu.core_type<tc>, window_params = [{transform_indices = @transform_0, window_bounds = array<i64: 1>}, {transform_indices = @transform_1, window_bounds = array<i64: 16, 128>}, {transform_indices = @transform_2, window_bounds = array<i64: 16, 128>}, {transform_indices = @transform_3, window_bounds = array<i64: 16, 128>}, {transform_indices = @transform_4, window_bounds = array<i64: 16, 128>}, {transform_indices = @transform_5, window_bounds = array<i64: 16, 128>}, {transform_indices = @transform_6, window_bounds = array<i64: 8, 128>}, {transform_indices = @transform_7, window_bounds = array<i64: 8, 128>}, {transform_indices = @transform_8, window_bounds = array<i64: 8, 128>}, {transform_indices = @transform_9, window_bounds = array<i64: 8, 128>}, {transform_indices = @transform_10, window_bounds = array<i64: 16, 128>}, {transform_indices = @transform_11, window_bounds = array<i64: 16, 128>}]} {
    %c0 = arith.constant 0 : index
    %0 = memref.load %arg1[%c0] : memref<1xf32, #tpu.memory_space<smem>>
    %cst = arith.constant 9.800000e+00 : f32
    %1 = arith.mulf %cst, %0 : f32
    %c0_0 = arith.constant 0 : index
    %c0_1 = arith.constant 0 : index
    %2 = vector.load %arg2[%c0_0, %c0_1] : memref<16x128xf32, #tpu.memory_space<vmem>>, vector<16x128xf32>
    %c0_2 = arith.constant 0 : index
    %c0_3 = arith.constant 0 : index
    %3 = vector.load %arg3[%c0_2, %c0_3] : memref<16x128xf32, #tpu.memory_space<vmem>>, vector<16x128xf32>
    %c0_4 = arith.constant 0 : index
    %c0_5 = arith.constant 0 : index
    %4 = vector.load %arg4[%c0_4, %c0_5] : memref<16x128xf32, #tpu.memory_space<vmem>>, vector<16x128xf32>
    %c0_6 = arith.constant 0 : index
    %c0_7 = arith.constant 0 : index
    %5 = vector.load %arg5[%c0_6, %c0_7] : memref<16x128xf32, #tpu.memory_space<vmem>>, vector<16x128xf32>
    %c0_8 = arith.constant 0 : index
    %c0_9 = arith.constant 0 : index
    %6 = vector.load %arg6[%c0_8, %c0_9] : memref<16x128xf32, #tpu.memory_space<vmem>>, vector<16x128xf32>
    %7 = arith.mulf %6, %6 : vector<16x128xf32>
    %8 = tpu.iota {dimensions = array<i32: 0>} : vector<16x128xi32>
    %9 = tpu.iota {dimensions = array<i32: 1>} : vector<16x128xi32>
    %c0_i32 = arith.constant 0 : i32
    %10 = arith.cmpi eq, %arg0, %c0_i32 : i32
    %11 = arith.addf %2, %3 : vector<16x128xf32>
    %c127_i32 = arith.constant 127 : i32
    %12 = tpu.dynamic_rotate %11 by %c127_i32 dim 1 : vector<16x128xf32>, i32 -> vector<16x128xf32>
    %c127_i32_10 = arith.constant 127 : i32
    %13 = tpu.dynamic_rotate %3 by %c127_i32_10 dim 1 : vector<16x128xf32>, i32 -> vector<16x128xf32>
    %14 = arith.maximumf %12, %11 : vector<16x128xf32>
    %15 = arith.maximumf %13, %3 : vector<16x128xf32>
    %16 = arith.subf %14, %15 : vector<16x128xf32>
    %cst_11 = arith.constant 1.000000e-07 : f32
    %17 = vector.broadcast %cst_11 : f32 to vector<16x128xf32>
    %18 = arith.maximumf %16, %17 : vector<16x128xf32>
    %19 = arith.subf %12, %11 : vector<16x128xf32>
    %cst_12 = arith.constant 1.000000e+00 : f32
    %20 = vector.broadcast %cst_12 : f32 to vector<16x128xf32>
    %21 = arith.mulf %19, %20 : vector<16x128xf32>
    %c0_13 = arith.constant 0 : index
    %c0_14 = arith.constant 0 : index
    %22 = vector.load %arg10[%c0_13, %c0_14] : memref<8x128xf32, #tpu.memory_space<vmem>>, vector<8x128xf32>
    %23 = vector.extract_strided_slice %22 {offsets = [7, 0], sizes = [1, 128], strides = [1, 1]} : vector<8x128xf32> to vector<1x128xf32>
    %cst_15 = arith.constant 0.000000e+00 : f32
    %24 = vector.broadcast %cst_15 : f32 to vector<1x128xf32>
    %25 = arith.select %10, %24, %23 : vector<1x128xf32>
    %c0_i32_16 = arith.constant 0 : i32
    %26 = vector.broadcast %c0_i32_16 : i32 to vector<16x128xi32>
    %27 = arith.cmpi eq, %8, %26 : vector<16x128xi32>
    %c1_i32 = arith.constant 1 : i32
    %28 = tpu.dynamic_rotate %5 by %c1_i32 dim 0 : vector<16x128xf32>, i32 -> vector<16x128xf32>
    %29 = vector.shape_cast %25 : vector<1x128xf32> to vector<1x128xf32>
    %30 = vector.broadcast %29 : vector<1x128xf32> to vector<16x128xf32>
    %31 = arith.select %27, %30, %28 : vector<16x128xi1>, vector<16x128xf32>
    %32 = arith.addf %5, %31 : vector<16x128xf32>
    %c127_i32_17 = arith.constant 127 : i32
    %33 = tpu.dynamic_rotate %32 by %c127_i32_17 dim 1 : vector<16x128xf32>, i32 -> vector<16x128xf32>
    %34 = arith.addf %32, %33 : vector<16x128xf32>
    %cst_18 = arith.constant 2.500000e-01 : f32
    %35 = vector.broadcast %cst_18 : f32 to vector<16x128xf32>
    %36 = arith.mulf %35, %34 : vector<16x128xf32>
    %37 = arith.mulf %4, %4 : vector<16x128xf32>
    %38 = arith.mulf %36, %36 : vector<16x128xf32>
    %39 = arith.addf %37, %38 : vector<16x128xf32>
    %cst_19 = arith.constant 9.99999993E-9 : f32
    %40 = vector.broadcast %cst_19 : f32 to vector<16x128xf32>
    %41 = arith.addf %39, %40 : vector<16x128xf32>
    %42 = math.sqrt %41 : vector<16x128xf32>
    %43 = math.log %18 : vector<16x128xf32>
    %cst_20 = arith.constant -2.33333325 : f32
    %44 = vector.broadcast %cst_20 : f32 to vector<16x128xf32>
    %45 = arith.mulf %43, %44 : vector<16x128xf32>
    %46 = math.exp %45 : vector<16x128xf32>
    %47 = vector.broadcast %1 : f32 to vector<16x128xf32>
    %48 = arith.mulf %47, %7 : vector<16x128xf32>
    %49 = arith.mulf %48, %42 : vector<16x128xf32>
    %50 = arith.mulf %49, %46 : vector<16x128xf32>
    %cst_21 = arith.constant 1.000000e+00 : f32
    %51 = vector.broadcast %cst_21 : f32 to vector<16x128xf32>
    %52 = arith.addf %51, %50 : vector<16x128xf32>
    %53 = vector.broadcast %1 : f32 to vector<16x128xf32>
    %54 = arith.mulf %53, %18 : vector<16x128xf32>
    %55 = arith.mulf %54, %21 : vector<16x128xf32>
    %56 = arith.subf %4, %55 : vector<16x128xf32>
    %57 = tpu.reciprocal %52 {approx = true} : vector<16x128xf32> -> vector<16x128xf32>
    %58 = arith.mulf %56, %57 : vector<16x128xf32>
    %c39_i32 = arith.constant 39 : i32
    %59 = vector.broadcast %c39_i32 : i32 to vector<16x128xi32>
    %60 = arith.cmpi sge, %9, %59 : vector<16x128xi32>
    %cst_22 = arith.constant 0.000000e+00 : f32
    %61 = vector.broadcast %cst_22 : f32 to vector<16x128xf32>
    %62 = arith.select %60, %61, %58 : vector<16x128xi1>, vector<16x128xf32>
    %c0_23 = arith.constant 0 : index
    %c0_24 = arith.constant 0 : index
    %63 = vector.load %arg7[%c0_23, %c0_24] : memref<8x128xf32, #tpu.memory_space<vmem>>, vector<8x128xf32>
    %64 = vector.extract_strided_slice %63 {offsets = [0, 0], sizes = [1, 128], strides = [1, 1]} : vector<8x128xf32> to vector<1x128xf32>
    %c0_25 = arith.constant 0 : index
    %c0_26 = arith.constant 0 : index
    %65 = vector.load %arg8[%c0_25, %c0_26] : memref<8x128xf32, #tpu.memory_space<vmem>>, vector<8x128xf32>
    %66 = vector.extract_strided_slice %65 {offsets = [0, 0], sizes = [1, 128], strides = [1, 1]} : vector<8x128xf32> to vector<1x128xf32>
    %67 = arith.addf %64, %66 : vector<1x128xf32>
    %c15_i32 = arith.constant 15 : i32
    %68 = vector.broadcast %c15_i32 : i32 to vector<16x128xi32>
    %69 = arith.cmpi eq, %8, %68 : vector<16x128xi32>
    %c15_i32_27 = arith.constant 15 : i32
    %70 = tpu.dynamic_rotate %11 by %c15_i32_27 dim 0 : vector<16x128xf32>, i32 -> vector<16x128xf32>
    %71 = vector.shape_cast %67 : vector<1x128xf32> to vector<1x128xf32>
    %72 = vector.broadcast %71 : vector<1x128xf32> to vector<16x128xf32>
    %73 = arith.select %69, %72, %70 : vector<16x128xi1>, vector<16x128xf32>
    %c15_i32_28 = arith.constant 15 : i32
    %74 = vector.broadcast %c15_i32_28 : i32 to vector<16x128xi32>
    %75 = arith.cmpi eq, %8, %74 : vector<16x128xi32>
    %c15_i32_29 = arith.constant 15 : i32
    %76 = tpu.dynamic_rotate %3 by %c15_i32_29 dim 0 : vector<16x128xf32>, i32 -> vector<16x128xf32>
    %77 = vector.shape_cast %66 : vector<1x128xf32> to vector<1x128xf32>
    %78 = vector.broadcast %77 : vector<1x128xf32> to vector<16x128xf32>
    %79 = arith.select %75, %78, %76 : vector<16x128xi1>, vector<16x128xf32>
    %80 = arith.maximumf %73, %11 : vector<16x128xf32>
    %81 = arith.maximumf %79, %3 : vector<16x128xf32>
    %82 = arith.subf %80, %81 : vector<16x128xf32>
    %cst_30 = arith.constant 1.000000e-07 : f32
    %83 = vector.broadcast %cst_30 : f32 to vector<16x128xf32>
    %84 = arith.maximumf %82, %83 : vector<16x128xf32>
    %85 = arith.subf %73, %11 : vector<16x128xf32>
    %cst_31 = arith.constant 1.000000e+00 : f32
    %86 = vector.broadcast %cst_31 : f32 to vector<16x128xf32>
    %87 = arith.mulf %85, %86 : vector<16x128xf32>
    %c0_32 = arith.constant 0 : index
    %c0_33 = arith.constant 0 : index
    %88 = vector.load %arg9[%c0_32, %c0_33] : memref<8x128xf32, #tpu.memory_space<vmem>>, vector<8x128xf32>
    %89 = vector.extract_strided_slice %88 {offsets = [0, 0], sizes = [1, 128], strides = [1, 1]} : vector<8x128xf32> to vector<1x128xf32>
    %c15_i32_34 = arith.constant 15 : i32
    %90 = vector.broadcast %c15_i32_34 : i32 to vector<16x128xi32>
    %91 = arith.cmpi eq, %8, %90 : vector<16x128xi32>
    %c15_i32_35 = arith.constant 15 : i32
    %92 = tpu.dynamic_rotate %4 by %c15_i32_35 dim 0 : vector<16x128xf32>, i32 -> vector<16x128xf32>
    %93 = vector.shape_cast %89 : vector<1x128xf32> to vector<1x128xf32>
    %94 = vector.broadcast %93 : vector<1x128xf32> to vector<16x128xf32>
    %95 = arith.select %91, %94, %92 : vector<16x128xi1>, vector<16x128xf32>
    %96 = arith.addf %4, %95 : vector<16x128xf32>
    %c0_i32_36 = arith.constant 0 : i32
    %97 = vector.broadcast %c0_i32_36 : i32 to vector<16x128xi32>
    %98 = arith.cmpi eq, %9, %97 : vector<16x128xi32>
    %c1_i32_37 = arith.constant 1 : i32
    %99 = tpu.dynamic_rotate %96 by %c1_i32_37 dim 1 : vector<16x128xf32>, i32 -> vector<16x128xf32>
    %cst_38 = arith.constant 0.000000e+00 : f32
    %100 = vector.broadcast %cst_38 : f32 to vector<16x128xf32>
    %101 = arith.select %98, %100, %99 : vector<16x128xi1>, vector<16x128xf32>
    %102 = arith.addf %96, %101 : vector<16x128xf32>
    %cst_39 = arith.constant 2.500000e-01 : f32
    %103 = vector.broadcast %cst_39 : f32 to vector<16x128xf32>
    %104 = arith.mulf %103, %102 : vector<16x128xf32>
    %105 = arith.mulf %5, %5 : vector<16x128xf32>
    %106 = arith.mulf %104, %104 : vector<16x128xf32>
    %107 = arith.addf %105, %106 : vector<16x128xf32>
    %cst_40 = arith.constant 9.99999993E-9 : f32
    %108 = vector.broadcast %cst_40 : f32 to vector<16x128xf32>
    %109 = arith.addf %107, %108 : vector<16x128xf32>
    %110 = math.sqrt %109 : vector<16x128xf32>
    %111 = math.log %84 : vector<16x128xf32>
    %cst_41 = arith.constant -2.33333325 : f32
    %112 = vector.broadcast %cst_41 : f32 to vector<16x128xf32>
    %113 = arith.mulf %111, %112 : vector<16x128xf32>
    %114 = math.exp %113 : vector<16x128xf32>
    %115 = vector.broadcast %1 : f32 to vector<16x128xf32>
    %116 = arith.mulf %115, %7 : vector<16x128xf32>
    %117 = arith.mulf %116, %110 : vector<16x128xf32>
    %118 = arith.mulf %117, %114 : vector<16x128xf32>
    %cst_42 = arith.constant 1.000000e+00 : f32
    %119 = vector.broadcast %cst_42 : f32 to vector<16x128xf32>
    %120 = arith.addf %119, %118 : vector<16x128xf32>
    %121 = vector.broadcast %1 : f32 to vector<16x128xf32>
    %122 = arith.mulf %121, %84 : vector<16x128xf32>
    %123 = arith.mulf %122, %87 : vector<16x128xf32>
    %124 = arith.subf %5, %123 : vector<16x128xf32>
    %125 = tpu.reciprocal %120 {approx = true} : vector<16x128xf32> -> vector<16x128xf32>
    %126 = arith.mulf %124, %125 : vector<16x128xf32>
    %c16_i32 = arith.constant 16 : i32
    %127 = arith.muli %arg0, %c16_i32 : i32
    %128 = vector.broadcast %127 : i32 to vector<16x128xi32>
    %129 = arith.addi %128, %8 : vector<16x128xi32>
    %c47_i32 = arith.constant 47 : i32
    %130 = vector.broadcast %c47_i32 : i32 to vector<16x128xi32>
    %131 = arith.cmpi sge, %129, %130 : vector<16x128xi32>
    %cst_43 = arith.constant 0.000000e+00 : f32
    %132 = vector.broadcast %cst_43 : f32 to vector<16x128xf32>
    %133 = arith.select %131, %132, %126 : vector<16x128xi1>, vector<16x128xf32>
    %c0_44 = arith.constant 0 : index
    %c0_45 = arith.constant 0 : index
    %134 = vector.load %arg11[%c0_44, %c0_45] : memref<16x128xf32, #tpu.memory_space<vmem>>, vector<16x128xf32>
    tpu.vector_store %arg11[%c0_44, %c0_45], %62 {strides = array<i32>} : memref<16x128xf32, #tpu.memory_space<vmem>>, vector<16x128xf32>,
    %c0_46 = arith.constant 0 : index
    %c0_47 = arith.constant 0 : index
    %135 = vector.load %arg12[%c0_46, %c0_47] : memref<16x128xf32, #tpu.memory_space<vmem>>, vector<16x128xf32>
    tpu.vector_store %arg12[%c0_46, %c0_47], %133 {strides = array<i32>} : memref<16x128xf32, #tpu.memory_space<vmem>>, vector<16x128xf32>,
    return
  }
  func.func @transform_0(%arg0: i32) -> i32 {
    %c0_i32 = arith.constant 0 : i32
    %c0_i32_0 = arith.constant 0 : i32
    return %c0_i32 : i32
  }
  func.func @transform_1(%arg0: i32) -> (i32, i32) {
    %c0_i32 = arith.constant 0 : i32
    %c0_i32_0 = arith.constant 0 : i32
    return %arg0, %c0_i32 : i32, i32
  }
  func.func @transform_2(%arg0: i32) -> (i32, i32) {
    %c0_i32 = arith.constant 0 : i32
    %c0_i32_0 = arith.constant 0 : i32
    return %arg0, %c0_i32 : i32, i32
  }
  func.func @transform_3(%arg0: i32) -> (i32, i32) {
    %c0_i32 = arith.constant 0 : i32
    %c0_i32_0 = arith.constant 0 : i32
    return %arg0, %c0_i32 : i32, i32
  }
  func.func @transform_4(%arg0: i32) -> (i32, i32) {
    %c0_i32 = arith.constant 0 : i32
    %c0_i32_0 = arith.constant 0 : i32
    return %arg0, %c0_i32 : i32, i32
  }
  func.func @transform_5(%arg0: i32) -> (i32, i32) {
    %c0_i32 = arith.constant 0 : i32
    %c0_i32_0 = arith.constant 0 : i32
    return %arg0, %c0_i32 : i32, i32
  }
  func.func @transform_6(%arg0: i32) -> (i32, i32) {
    %c1_i32 = arith.constant 1 : i32
    %0 = arith.addi %arg0, %c1_i32 : i32
    %c2_i32 = arith.constant 2 : i32
    %1 = arith.muli %0, %c2_i32 : i32
    %c5_i32 = arith.constant 5 : i32
    %2 = arith.minsi %1, %c5_i32 : i32
    %c0_i32 = arith.constant 0 : i32
    %c0_i32_0 = arith.constant 0 : i32
    return %2, %c0_i32 : i32, i32
  }
  func.func @transform_7(%arg0: i32) -> (i32, i32) {
    %c1_i32 = arith.constant 1 : i32
    %0 = arith.addi %arg0, %c1_i32 : i32
    %c2_i32 = arith.constant 2 : i32
    %1 = arith.muli %0, %c2_i32 : i32
    %c5_i32 = arith.constant 5 : i32
    %2 = arith.minsi %1, %c5_i32 : i32
    %c0_i32 = arith.constant 0 : i32
    %c0_i32_0 = arith.constant 0 : i32
    return %2, %c0_i32 : i32, i32
  }
  func.func @transform_8(%arg0: i32) -> (i32, i32) {
    %c1_i32 = arith.constant 1 : i32
    %0 = arith.addi %arg0, %c1_i32 : i32
    %c2_i32 = arith.constant 2 : i32
    %1 = arith.muli %0, %c2_i32 : i32
    %c5_i32 = arith.constant 5 : i32
    %2 = arith.minsi %1, %c5_i32 : i32
    %c0_i32 = arith.constant 0 : i32
    %c0_i32_0 = arith.constant 0 : i32
    return %2, %c0_i32 : i32, i32
  }
  func.func @transform_9(%arg0: i32) -> (i32, i32) {
    %c2_i32 = arith.constant 2 : i32
    %0 = arith.muli %arg0, %c2_i32 : i32
    %c1_i32 = arith.constant 1 : i32
    %1 = arith.subi %0, %c1_i32 : i32
    %c0_i32 = arith.constant 0 : i32
    %2 = arith.maxsi %1, %c0_i32 : i32
    %c0_i32_0 = arith.constant 0 : i32
    %c0_i32_1 = arith.constant 0 : i32
    return %2, %c0_i32_0 : i32, i32
  }
  func.func @transform_10(%arg0: i32) -> (i32, i32) {
    %c0_i32 = arith.constant 0 : i32
    %c0_i32_0 = arith.constant 0 : i32
    return %arg0, %c0_i32 : i32, i32
  }
  func.func @transform_11(%arg0: i32) -> (i32, i32) {
    %c0_i32 = arith.constant 0 : i32
    %c0_i32_0 = arith.constant 0 : i32
    return %arg0, %c0_i32 : i32, i32
  }
}

</mosaic_0001>

<bundles_post_ra>
// kernel: tpu_custom_call.1
= control target key start
LH: loop header
LB: loop body
LE: loop exit
PB: predicated region body
PF: predicated region fallthrough
CT: control target
= control target key end

     0   :  { %s2984_s0 = inlined_call_operand.<no memory space> [shape: f32[1], index: 0, kind: input, shape index: {}]   ;;  %s2985_s1 = inlined_call_operand.hbm [shape: f32[48,128], index: 1, kind: input, shape index: {}]   ;;  %s2986_s2 = inlined_call_operand.hbm [shape: f32[48,128], index: 2, kind: input, shape index: {}]   ;;  %s2987_s3 = inlined_call_operand.hbm [shape: f32[48,128], index: 3, kind: input, shape index: {}]   ;;  %s2988_s4 = inlined_call_operand.hbm [shape: f32[48,128], index: 4, kind: input, shape index: {}]   ;;  %s2989_s5 = inlined_call_operand.hbm [shape: f32[48,128], index: 5, kind: input, shape index: {}]   ;;  %s2990_s6 = inlined_call_operand.hbm [shape: f32[48,128], index: 6, kind: input, shape index: {}]   ;;  %s2991_s7 = inlined_call_operand.hbm [shape: f32[48,128], index: 7, kind: input, shape index: {}]   ;;  %s2992_s8 = inlined_call_operand.hbm [shape: f32[48,128], index: 8, kind: input, shape index: {}]   ;;  %s2993_s9 = inlined_call_operand.hbm [shape: f32[48,128], index: 9, kind: input, shape index: {}]   ;;  %s2994_s10 = inlined_call_operand.hbm [shape: f32[48,128], index: 10, kind: output, shape index: {0}]   ;;  %s2995_s11 = inlined_call_operand.hbm [shape: f32[48,128], index: 11, kind: output, shape index: {1}]  }
   0x1   :  { %3039 = sst [smem:[#allocation44_spill]] %s2986_s2 }
   0x2   :  { %3040 = sst [smem:[#allocation45_spill]] %s2988_s4 }
   0x3   :  { %3041 = sst [smem:[#allocation46_spill]] %s2990_s6 }
   0x4   :  { %3042 = sst [smem:[#allocation47_spill]] %s2993_s9 }
   0x5   :  { %3043 = sst [smem:[#allocation48_spill]] %s2994_s10 }
   0x6   :  { %3044 = sst [smem:[#allocation49_spill]] %s2995_s11 }
   0x7   :  { %17 = sst [smem:[#allocation2]] %s2984_s0 }
   0x8   :  { %18 = vsyncpa [#allocation4], 0 }
   0x9   :  { %20 = vsyncpa [#allocation4 + $0x1], 0 }
   0xa   :  { %21 = vsyncpa [#allocation7], 0 }
   0xb   :  { %23 = vsyncpa [#allocation7 + $0x1], 0 }
   0xc   :  { %24 = vsyncpa [#allocation10], 0 }
   0xd   :  { %26 = vsyncpa [#allocation10 + $0x1], 0 }
   0xe   :  { %27 = vsyncpa [#allocation13], 0 }
   0xf   :  { %29 = vsyncpa [#allocation13 + $0x1], 0 }
  0x10   :  { %30 = vsyncpa [#allocation16], 0 }
  0x11   :  { %32 = vsyncpa [#allocation16 + $0x1], 0 }
  0x12   :  { %33 = vsyncpa [#allocation5], 0 }
  0x13   :  { %35 = vsyncpa [#allocation5 + $0x1], 0 }
  0x14   :  { %36 = vsyncpa [#allocation20], 0 }
  0x15   :  { %38 = vsyncpa [#allocation20 + $0x1], 0  ;;  %s2131_s19 = smov 0   ;;  %s2133_s20 = smov 0  }
  0x16   :  { %s2135_s21 = smov 0   ;;  %s2137_s0 = smov 0  }
  0x17   :  { %s2139_s22 = smov 0   ;;  %s2141_s23 = smov 0  }
  0x18   :  { %s2143_s24 = smov 0   ;;  %s2145_s25 = smov 0  }
  0x19   :  { %s2147_s26 = smov 0   ;;  %s2149_s27 = smov 0  }
  0x1a LB: > { %3045 = sst [smem:[#allocation29_spill]] %s2013_s19  ;;  %s1338_s28 = sadd.s32 4294967294, %s2049_s27   ;;  %s2049_s27 = sphi %s2149_s27, %s3121_s27   ;;  %s2045_s26 = sphi %s2147_s26, %s3132_s26   ;;  %s2041_s25 = sphi %s2145_s25, %s3131_s25   ;;  %s2037_s24 = sphi %s2143_s24, %s3130_s24   ;;  %s2033_s23 = sphi %s2141_s23, %s3125_s23   ;;  %s2029_s22 = sphi %s2139_s22, %s3124_s22   ;;  %s2025_s0 = sphi %s2137_s0, %s3123_s0   ;;  %s2021_s21 = sphi %s2135_s21, %s3129_s21   ;;  %s2017_s20 = sphi %s2133_s20, %s3128_s20   ;;  %s2013_s19 = sphi %s2131_s19, %s3122_s19  }
  0x1b   : > { %3046 = sst [smem:[#allocation30_spill]] %s2017_s20  ;;  %s2183_s29 = sadd.s32 1, %s2049_s27  }
  0x1c   : > { %3047 = sst [smem:[#allocation31_spill]] %s2029_s22  ;;  %s69_s30 = ssub.s32 %s2049_s27, %s2183_s29 }
  0x1d   : > { %3048 = sst [smem:[#allocation32_spill]] %s2033_s23  ;;  %s72_s12 = sadd.s32 1, %s2045_s26 }
  0x1e   : > { %3049 = sst [smem:[#allocation33_spill]] %s2037_s24  ;;  %p70_p0 = scmp.eq.s32.totalorder %s69_s30, 0 }
  0x1f   : > { %3050 = sst [smem:[#allocation34_spill]] %s2041_s25  ;;  %p3004_p1 = scmp.ne.s32.totalorder %s2045_s26, %s2041_s25 }
  0x20   : > { %3051 = sst [smem:[#allocation35_spill]] %s2183_s29  ;;  %p3005_p2 = scmp.eq.s32.totalorder %s2049_s27, 0 }
  0x21   : > { %p3006_p3 = scmp.ne.s32.totalorder %s2041_s25, %s2037_s24  ;;  %p355_p5 = scmp.eq.s32.totalorder %s1338_s28, 2 }
  0x22   : > { %s2194_s13 = scalar_select %p70_p0, %s2045_s26, %s72_s12  }
  0x23   : > { %p81_p4 = por %p3005_p2, %p3004_p1  ;;  %p3003_p6 = scmp.lt.s32.totalorder %s2049_s27, 3 }
  0x24   : > { %3052 = sst [smem:[#allocation36_spill]] %s2194_s13  ;;  %p2205_p7 = por %p355_p5, %p3006_p3 }
  0x25   : > { %s2996_s15 = sand.u32 1, %s2045_s26   ;;  %s2215_s17 = sshll.u32 %s2049_s27, 8 }
  0x26   : > { %s3053_s14 = scalar_select %p2205_p7, 1, 0 }
  0x27   : > { %s2212_s16 = sshll.u32 %s2996_s15, 4  ;;  %p2219_p8 = pnand %p3003_p6, %p81_p4 }
  0x28   : > { %3054 = sst [smem:[#allocation37_spill]] %s3053_s14  ;;  %s2224_s28 = sand.u32 1, %s2049_s27  }
  0x29   : > { %s3055_s18 = scalar_select %p2219_p8, 1, 0 }
  0x2a   : > { %s3056_s2 = sld [smem:[#allocation44_spill]]  ;;  %s429_s15 = scalar_lea.vmem [#allocation6], %s2212_s16 }
  0x2b   : > { %s436_s29 = sshll.u32 %s429_s15, 4  ;;  %p2242_p12 = pneg %p2219_p8  ;;  %s2234_s29 = int_to_ptr.vmem [resolvable:$true] %s436_s29 }
  0x2d   : > { %s3057_s11 = scalar_select %p2242_p12, 1, 0 }
  0x30   : > { %s2230_s13 = scalar_lea.hbm %s3056_s2, %s2215_s17  ;;  %s1618_s15 = scalar_lea.hbm %s3056_s2, 768 }
  0x31   : > { %s1613_s10 = scalar_lea.hbm %s2230_s13, 256  ;;  %p1619_p4 = scmp.lt.u32.totalorder %s2230_s13, %s3056_s2 }
  0x32   : > { %p1614_p11 = scmp.ne.s32.totalorder %s2230_s13, %s1613_s10  ;;  %p1620_p5 = scmp.lt.u32.totalorder %s1618_s15, %s1613_s10 }
  0x33   : > { %p1622_p1 = scmp.lt.u32.totalorder %s1613_s10, %s2230_s13 }
  0x34   : > { %p1616_p13 = pnand %p2242_p12, %p1614_p11  ;;  %p1621_p6 = por %p1620_p5, %p1619_p4 }
  0x36   : > { %p1617_p0 = pneg %p1616_p13  ;;  %p1623_p2 = por %p1622_p1, %p1621_p6 }
  0x38   : > { %p1624_p3 = pnand %p1623_p2, %p1617_p0 }
  0x3a   : > { %1627 = shalt.err (!%p1624_p3)
}
  0x3b   : > { %s1628_s14 = scalar_lea.vmem %s2234_s29, 256  ;;  %s2051_s30 = smov [#allocation6]  }
  0x3c   : > { %p1629_p11 = scmp.ne.s32.totalorder %s2234_s29, %s1628_s14  ;;  %s1633_s12 = sshll.u32 %s2051_s30, 4  ;;  %s1634_s12 = int_to_ptr.vmem [resolvable:$false] %s1633_s12 }
  0x3d   : > { %s1635_s9 = scalar_lea.vmem %s1634_s12, 512  ;;  %p1636_p10 = scmp.lt.s32.totalorder %s2234_s29, %s1634_s12 }
  0x3e   : > { %p1631_p13 = pnand %p1629_p11, %p2242_p12  ;;  %p1637_p7 = scmp.lt.s32.totalorder %s1635_s9, %s1628_s14 }
  0x40   : > { %p1632_p9 = pneg %p1631_p13  ;;  %p1638_p4 = por %p1637_p7, %p1636_p10 }
  0x42   : > { %p1639_p5 = pnand %p1638_p4, %p1632_p9 }
  0x44   : > { %1642 = shalt.err (!%p1639_p5)
}
  0x45   : > { %s3008_s10 = smov 128   ;;  %s3010_s19 = smov 8  }
  0x46   : > { %s3058_s14 = scalar_lea.sflag [#allocation7], %s2224_s28  ;;  %p3059_p1 = scmp.lt.s32.totalorder %s2049_s27, 4 }
  0x47   : > { %1461 = dma.hbm_to_vmem [thread:$0]  (!%p2219_p8), %s2230_s13, 256, %s2234_s29, %s3058_s14, %s3008_s10, %s3008_s10, %s3010_s19  }
  0x48   : > { %p3060_p2 = scmp.ge.s32.totalorder %s2049_s27, 1  ;;  %s3063_s4 = sld [smem:[#allocation45_spill]] }
  0x49   : > { %s471_s2 = scalar_lea.vmem [#allocation9], %s2212_s16  ;;  %s3013_s29 = scalar_lea.sflag [#allocation10], %s2224_s28 }
  0x4a   : > { %p2274_p3 = pnand %p3060_p2, %p3059_p1  ;;  %s478_s20 = sshll.u32 %s471_s2, 4  ;;  %s2285_s20 = int_to_ptr.vmem [resolvable:$true] %s478_s20 }
  0x4c   : > { %s3061_s15 = scalar_select %p2274_p3, 1, 0 }
  0x4e   : > { %3062 = sst [smem:[#allocation38_spill]] %s3061_s15  ;;  %s2282_s9 = scalar_lea.hbm %s3063_s4, %s2215_s17 }
  0x4f   : > { %s1643_s13 = scalar_lea.hbm %s2282_s9, 256  ;;  %s1648_s30 = scalar_lea.hbm %s3063_s4, 768 }
  0x50   : > { %p1644_p6 = scmp.ne.s32.totalorder %s2282_s9, %s1643_s13  ;;  %p1649_p10 = scmp.lt.u32.totalorder %s2282_s9, %s3063_s4 }
  0x51   : > { %p1650_p0 = scmp.lt.u32.totalorder %s1648_s30, %s1643_s13  ;;  %p1652_p13 = scmp.lt.u32.totalorder %s1643_s13, %s2282_s9 }
  0x52   : > { %p1646_p7 = pnand %p1644_p6, %p2242_p12 }
  0x53   : > { %p1651_p11 = por %p1650_p0, %p1649_p10 }
  0x54   : > { %p1647_p9 = pneg %p1646_p7 }
  0x55   : > { %p1653_p4 = por %p1652_p13, %p1651_p11 }
  0x57   : > { %p1654_p5 = pnand %p1653_p4, %p1647_p9 }
  0x59   : > { %1657 = shalt.err (!%p1654_p5)
}
  0x5a   : > { %s1658_s2 = scalar_lea.vmem %s2285_s20, 256  ;;  %s2054_s10 = smov [#allocation9]  }
  0x5b   : > { %p1659_p1 = scmp.ne.s32.totalorder %s2285_s20, %s1658_s2  ;;  %s1663_s14 = sshll.u32 %s2054_s10, 4  ;;  %s1664_s14 = int_to_ptr.vmem [resolvable:$false] %s1663_s14 }
  0x5c   : > { %s1665_s19 = scalar_lea.vmem %s1664_s14, 512  ;;  %p1666_p7 = scmp.lt.s32.totalorder %s2285_s20, %s1664_s14 }
  0x5d   : > { %p1661_p2 = pnand %p1659_p1, %p2242_p12  ;;  %p1667_p3 = scmp.lt.s32.totalorder %s1665_s19, %s1658_s2 }
  0x5f   : > { %p1662_p6 = pneg %p1661_p2  ;;  %p1668_p10 = por %p1667_p3, %p1666_p7 }
  0x61   : > { %p1669_p0 = pnand %p1668_p10, %p1662_p6 }
  0x63   : > { %1672 = shalt.err (!%p1669_p0)
}
  0x64   : > { %s3064_s13 = smov 8   ;;  %s3065_s30 = smov 128  }
  0x65   : > { %1467 = dma.hbm_to_vmem [thread:$0]  (!%p2219_p8), %s2282_s9, 256, %s2285_s20, %s3013_s29, %s3065_s30, %s3065_s30, %s3064_s13  }
  0x66   : > { %s2315_s12 = sadd.s32 4294967295, %s2049_s27   ;;  %s3012_s2 = sshll.u32 %s2049_s27, 1 }
  0x67   : > { %3066 = sst [smem:[#allocation39_spill]] %s2315_s12  ;;  %p3025_p3 = scmp.eq.s32.totalorder %s2315_s12, 0 }
  0x68   : > { %s2321_s10 = sadd.s32 2, %s3012_s2  ;;  %p3067_p11 = scmp.ne.s32.totalorder %s2041_s25, %s2037_s24 }
  0x69   : > { %p201_p9 = scmp.lt.s32.totalorder %s2321_s10, 5  ;;  %s1403_s20 = sadd.s32 2, %s2321_s10 }
  0x6a   : > { %p2330_p13 = por %p3025_p3, %p3067_p11  ;;  %p205_p4 = scmp.lt.s32.totalorder %s1403_s20, 5 }
  0x6b   : > { %s202_s14 = scalar_select %p201_p9, %s2321_s10, 5 }
  0x6c   : > { %s3068_s9 = scalar_select %p2330_p13, 1, 0 }
  0x6d   : > { %s3134_s20 = smov (!%p205_p4, %s1403_s20), 5  ;;  %s210_s19 = sadd.s32 1, %s2033_s23 }
  0x6e   : > { %3069 = sst [smem:[#allocation40_spill]] %s3068_s9  ;;  %p217_p5 = scmp.ne.s32.totalorder %s2033_s23, %s2029_s22 }
  0x6f   : > { %s207_s2 = ssub.s32 %s202_s14, %s3134_s20  ;;  %p223_p1 = scmp.ne.s32.totalorder %s2029_s22, %s2025_s0 }
  0x70   : > { %p208_p2 = scmp.eq.s32.totalorder %s207_s2, 0  ;;  %p3070_p6 = scmp.eq.s32.totalorder %s2049_s27, 0 }
  0x71   : > { %p2344_p10 = por %p223_p1, %p3025_p3  ;;  %p349_p0 = scmp.eq.s32.totalorder %s2315_s12, 2 }
  0x72   : > { %p219_p7 = por %p217_p5, %p3070_p6  ;;  %p3074_p11 = scmp.ne.s32.totalorder %s2045_s26, %s2041_s25 }
  0x73   : > { %s3071_s29 = scalar_select %p2344_p10, 1, 0 }
  0x74   : > { %s2350_s4 = scalar_select %p208_p2, %s2033_s23, %s210_s19  }
  0x75   : > { %3072 = sst [smem:[#allocation41_spill]] %s3071_s29  ;;  %p2355_p9 = por %p349_p0, %p3074_p11 }
  0x76   : > { %3073 = sst [smem:[#allocation42_spill]] %s2350_s4  ;;  %s511_s9 = sand.u32 1, %s2033_s23  }
  0x77   : > { %s3075_s24 = scalar_select %p2355_p9, 1, 0 }
  0x78   : > { %s2360_s20 = sshll.u32 %s202_s14, 7  ;;  %s2362_s0 = sshll.u32 %s511_s9, 3 }
  0x79   : > { %3076 = sst [smem:[#allocation43_spill]] %s3075_s24  ;;  %s3077_s6 = sld [smem:[#allocation46_spill]] }
  0x7a   : > { %p3078_p4 = scmp.lt.s32.totalorder %s2049_s27, 3  ;;  %s513_s14 = scalar_lea.vmem [#allocation12], %s2362_s0 }
  0x7b   : > { %s524_s4 = sshll.u32 %s513_s14, 4  ;;  %s2377_s4 = int_to_ptr.vmem [resolvable:$true] %s524_s4 }
  0x7c   : > { %p2372_p5 = pnand %p3078_p4, %p219_p7 }
  0x7e   : > { %s3079_s19 = scalar_select %p2372_p5, 1, 0 }
  0x7f   : > { %s2368_s15 = scalar_lea.hbm %s3077_s6, %s2360_s20  ;;  %p2384_p2 = pneg %p2372_p5 }
  0x80   : > { %s1673_s23 = scalar_lea.hbm %s2368_s15, 128  ;;  %s1678_s29 = scalar_lea.hbm %s3077_s6, 768 }
  0x81   : > { %p1674_p1 = scmp.ne.s32.totalorder %s2368_s15, %s1673_s23  ;;  %p1679_p0 = scmp.lt.u32.totalorder %s2368_s15, %s3077_s6 }
  0x82   : > { %s3080_s22 = scalar_select %p2384_p2, 1, 0 }
  0x83   : > { %p1676_p6 = pnand %p2384_p2, %p1674_p1  ;;  %p1680_p11 = scmp.lt.u32.totalorder %s1678_s29, %s1673_s23 }
  0x84   : > { %p1682_p3 = scmp.lt.u32.totalorder %s1673_s23, %s2368_s15 }
  0x85   : > { %p1677_p7 = pneg %p1676_p6  ;;  %p1681_p4 = por %p1680_p11, %p1679_p0 }
  0x87   : > { %p1683_p9 = por %p1682_p3, %p1681_p4 }
  0x89   : > { %p1684_p10 = pnand %p1683_p9, %p1677_p7 }
  0x8b   : > { %1687 = shalt.err (!%p1684_p10)
}
  0x8c   : > { %s1688_s9 = scalar_lea.vmem %s2377_s4, 128  ;;  %s2055_s24 = smov [#allocation12]  }
  0x8d   : > { %p1689_p1 = scmp.ne.s32.totalorder %s2377_s4, %s1688_s9  ;;  %s1693_s2 = sshll.u32 %s2055_s24, 4  ;;  %s1694_s2 = int_to_ptr.vmem [resolvable:$false] %s1693_s2 }
  0x8e   : > { %s1695_s25 = scalar_lea.vmem %s1694_s2, 256  ;;  %p1696_p8 = scmp.lt.s32.totalorder %s2377_s4, %s1694_s2 }
  0x8f   : > { %p1691_p6 = pnand %p1689_p1, %p2384_p2  ;;  %p1697_p12 = scmp.lt.s32.totalorder %s1695_s25, %s1688_s9 }
  0x91   : > { %p1692_p13 = pneg %p1691_p6  ;;  %p1698_p0 = por %p1697_p12, %p1696_p8 }
  0x93   : > { %p1699_p11 = pnand %p1698_p0, %p1692_p13 }
  0x95   : > { %1702 = shalt.err (!%p1699_p11)
}
  0x96   : > { %s3081_s23 = scalar_lea.sflag [#allocation13], %s2224_s28  ;;  %s2413_s24 = scalar_lea.hbm %s2992_s8, %s2360_s20 }
  0x97   : > { %1473 = dma.hbm_to_vmem [thread:$0]  (!%p2372_p5), %s2368_s15, 128, %s2377_s4, %s3081_s23  }
  0x98   : > { %s557_s9 = scalar_lea.vmem [#allocation15], %s2362_s0  ;;  %s1703_s6 = scalar_lea.hbm %s2413_s24, 128 }
  0x99   : > { %s568_s2 = sshll.u32 %s557_s9, 4  ;;  %p1704_p8 = scmp.ne.s32.totalorder %s2413_s24, %s1703_s6  ;;  %s569_s2 = int_to_ptr.vmem [resolvable:$true] %s568_s2 }
  0x9a   : > { %s1708_s15 = scalar_lea.hbm %s2992_s8, 768  ;;  %p1709_p13 = scmp.lt.u32.totalorder %s2413_s24, %s2992_s8 }
  0x9b   : > { %p1706_p12 = pnand %p1704_p8, %p2384_p2  ;;  %p1710_p10 = scmp.lt.u32.totalorder %s1708_s15, %s1703_s6 }
  0x9c   : > { %p1712_p7 = scmp.lt.u32.totalorder %s1703_s6, %s2413_s24 }
  0x9d   : > { %p1707_p3 = pneg %p1706_p12  ;;  %p1711_p9 = por %p1710_p10, %p1709_p13 }
  0x9f   : > { %p1713_p4 = por %p1712_p7, %p1711_p9 }
  0xa1   : > { %p1714_p1 = pnand %p1713_p4, %p1707_p3 }
  0xa3   : > { %1717 = shalt.err (!%p1714_p1)
}
  0xa4   : > { %s1718_s14 = scalar_lea.vmem %s569_s2, 128  ;;  %s2056_s9 = smov [#allocation15]  }
  0xa5   : > { %p1719_p6 = scmp.ne.s32.totalorder %s569_s2, %s1718_s14  ;;  %s1723_s25 = sshll.u32 %s2056_s9, 4  ;;  %s1724_s25 = int_to_ptr.vmem [resolvable:$false] %s1723_s25 }
  0xa6   : > { %s1725_s12 = scalar_lea.vmem %s1724_s25, 256  ;;  %p1726_p8 = scmp.lt.s32.totalorder %s569_s2, %s1724_s25 }
  0xa7   : > { %p1721_p0 = pnand %p1719_p6, %p2384_p2  ;;  %p1727_p12 = scmp.lt.s32.totalorder %s1725_s12, %s1718_s14 }
  0xa9   : > { %p1722_p11 = pneg %p1721_p0  ;;  %p1728_p5 = por %p1727_p12, %p1726_p8 }
  0xab   : > { %p1729_p10 = pnand %p1728_p5, %p1722_p11 }
  0xad   : > { %1732 = shalt.err (!%p1729_p10)
}
  0xae   : > { %p3082_p13 = scmp.ne.s32.totalorder %s3079_s19, 0  ;;  %s3083_s6 = scalar_lea.sflag [#allocation16], %s2224_s28 }
  0xaf   : > { %s2440_s23 = scalar_lea.hbm %s2985_s1, %s2215_s17  ;;  %s408_s25 = scalar_lea.vmem [#allocation3], %s2212_s16 }
  0xb0   : > { %1479 = dma.hbm_to_vmem [thread:$0]  (!%p3082_p13), %s2413_s24, 128, %s569_s2, %s3083_s6  }
  0xb1   : > { %s415_s29 = sshll.u32 %s408_s25, 4  ;;  %s3084_s14 = sand.u32 1, %s2045_s26   ;;  %s2443_s29 = int_to_ptr.vmem [resolvable:$true] %s415_s29 }
  0xb2   : > { %s2447_s9 = scalar_lea.sflag [#allocation4], %s3084_s14  ;;  %s1733_s12 = scalar_lea.hbm %s2440_s23, 256 }
  0xb3   : > { %p1734_p5 = scmp.ne.s32.totalorder %s2440_s23, %s1733_s12  ;;  %p3085_p3 = scmp.ne.s32.totalorder %s3057_s11, 0 }
  0xb4   : > { %s1738_s6 = scalar_lea.hbm %s2985_s1, 768  ;;  %p1739_p4 = scmp.lt.u32.totalorder %s2440_s23, %s2985_s1 }
  0xb5   : > { %p1736_p9 = pnand %p1734_p5, %p3085_p3  ;;  %p1740_p1 = scmp.lt.u32.totalorder %s1738_s6, %s1733_s12 }
  0xb6   : > { %p1742_p0 = scmp.lt.u32.totalorder %s1733_s12, %s2440_s23 }
  0xb7   : > { %p1737_p7 = pneg %p1736_p9  ;;  %p1741_p6 = por %p1740_p1, %p1739_p4 }
  0xb9   : > { %p1743_p11 = por %p1742_p0, %p1741_p6 }
  0xbb   : > { %p1744_p8 = pnand %p1743_p11, %p1737_p7 }
  0xbd   : > { %1747 = shalt.err (!%p1744_p8)
}
  0xbe   : > { %s1748_s25 = scalar_lea.vmem %s2443_s29, 256  ;;  %s2057_s14 = smov [#allocation3]  }
  0xbf   : > { %p1749_p12 = scmp.ne.s32.totalorder %s2443_s29, %s1748_s25  ;;  %s1753_s24 = sshll.u32 %s2057_s14, 4  ;;  %s1754_s24 = int_to_ptr.vmem [resolvable:$false] %s1753_s24 }
  0xc0   : > { %s1755_s2 = scalar_lea.vmem %s1754_s24, 512  ;;  %p1756_p9 = scmp.lt.s32.totalorder %s2443_s29, %s1754_s24 }
  0xc1   : > { %p1751_p10 = pnand %p1749_p12, %p3085_p3  ;;  %p1757_p13 = scmp.lt.s32.totalorder %s1755_s2, %s1748_s25 }
  0xc3   : > { %p1752_p5 = pneg %p1751_p10  ;;  %p1758_p4 = por %p1757_p13, %p1756_p9 }
  0xc5   : > { %p1759_p1 = pnand %p1758_p4, %p1752_p5 }
  0xc7   : > { %1762 = shalt.err (!%p1759_p1)
}
  0xc8   : > { %p3086_p7 = scmp.ne.s32.totalorder %s3055_s18, 0  ;;  %s2478_s4 = scalar_lea.hbm %s2987_s3, %s2215_s17 }
  0xc9   : > { %s450_s15 = scalar_lea.vmem [#allocation8], %s2212_s16  ;;  %s1763_s14 = scalar_lea.hbm %s2478_s4, 256 }
  0xca   : > { %1458 = dma.hbm_to_vmem [thread:$0]  (!%p3086_p7), %s2440_s23, 256, %s2443_s29, %s2447_s9, %s3065_s30, %s3065_s30, %s3064_s13  }
  0xcb   : > { %s457_s25 = sshll.u32 %s450_s15, 4  ;;  %p1764_p13 = scmp.ne.s32.totalorder %s2478_s4, %s1763_s14  ;;  %s2481_s25 = int_to_ptr.vmem [resolvable:$true] %s457_s25 }
  0xcc   : > { %s1768_s29 = scalar_lea.hbm %s2987_s3, 768  ;;  %p1769_p11 = scmp.lt.u32.totalorder %s2478_s4, %s2987_s3 }
  0xcd   : > { %p1766_p6 = pnand %p1764_p13, %p3085_p3  ;;  %p1770_p8 = scmp.lt.u32.totalorder %s1768_s29, %s1763_s14 }
  0xce   : > { %p1772_p10 = scmp.lt.u32.totalorder %s1763_s14, %s2478_s4 }
  0xcf   : > { %p1767_p0 = pneg %p1766_p6  ;;  %p1771_p12 = por %p1770_p8, %p1769_p11 }
  0xd1   : > { %p1773_p5 = por %p1772_p10, %p1771_p12 }
  0xd3   : > { %p1774_p9 = pnand %p1773_p5, %p1767_p0 }
  0xd5   : > { %1777 = shalt.err (!%p1774_p9)
}
  0xd6   : > { %s1778_s12 = scalar_lea.vmem %s2481_s25, 256  ;;  %s2058_s6 = smov [#allocation8]  }
  0xd7   : > { %p1779_p4 = scmp.ne.s32.totalorder %s2481_s25, %s1778_s12  ;;  %s1783_s15 = sshll.u32 %s2058_s6, 4  ;;  %s1784_s15 = int_to_ptr.vmem [resolvable:$false] %s1783_s15 }
  0xd8   : > { %s1785_s24 = scalar_lea.vmem %s1784_s15, 512  ;;  %p1786_p6 = scmp.lt.s32.totalorder %s2481_s25, %s1784_s15 }
  0xd9   : > { %p1781_p1 = pnand %p1779_p4, %p3085_p3  ;;  %p1787_p2 = scmp.lt.s32.totalorder %s1785_s24, %s1778_s12 }
  0xdb   : > { %p1782_p13 = pneg %p1781_p1  ;;  %p1788_p11 = por %p1787_p2, %p1786_p6 }
  0xdd   : > { %p1789_p8 = pnand %p1788_p11, %p1782_p13 }
  0xdf   : > { %1792 = shalt.err (!%p1789_p8)
}
  0xe0   : > { %s3087_s14 = scalar_lea.sflag [#allocation7], %s2224_s28  ;;  %s2513_s9 = scalar_lea.hbm %s2989_s5, %s2215_s17 }
  0xe1   : > { %1464 = dma.hbm_to_vmem [thread:$0]  (!%p3086_p7), %s2478_s4, 256, %s2481_s25, %s3087_s14, %s3065_s30, %s3065_s30, %s3064_s13  }
  0xe2   : > { %s492_s2 = scalar_lea.vmem [#allocation11], %s2212_s16  ;;  %s1793_s6 = scalar_lea.hbm %s2513_s9, 256 }
  0xe3   : > { %s499_s12 = sshll.u32 %s492_s2, 4  ;;  %p1794_p2 = scmp.ne.s32.totalorder %s2513_s9, %s1793_s6  ;;  %s2516_s12 = int_to_ptr.vmem [resolvable:$true] %s499_s12 }
  0xe4   : > { %s1798_s25 = scalar_lea.hbm %s2989_s5, 768  ;;  %p1799_p10 = scmp.lt.u32.totalorder %s2513_s9, %s2989_s5 }
  0xe5   : > { %p1796_p0 = pnand %p1794_p2, %p3085_p3  ;;  %p1800_p5 = scmp.lt.u32.totalorder %s1798_s25, %s1793_s6 }
  0xe6   : > { %p1802_p4 = scmp.lt.u32.totalorder %s1793_s6, %s2513_s9 }
  0xe7   : > { %p1797_p12 = pneg %p1796_p0  ;;  %p1801_p9 = por %p1800_p5, %p1799_p10 }
  0xe9   : > { %p1803_p1 = por %p1802_p4, %p1801_p9 }
  0xeb   : > { %p1804_p13 = pnand %p1803_p1, %p1797_p12 }
  0xed   : > { %1807 = shalt.err (!%p1804_p13)
}
  0xee   : > { %s1808_s16 = scalar_lea.vmem %s2516_s12, 256  ;;  %s2059_s14 = smov [#allocation11]  }
  0xef   : > { %p1809_p6 = scmp.ne.s32.totalorder %s2516_s12, %s1808_s16  ;;  %s1813_s23 = sshll.u32 %s2059_s14, 4  ;;  %s1814_s23 = int_to_ptr.vmem [resolvable:$false] %s1813_s23 }
  0xf0   : > { %s1815_s29 = scalar_lea.vmem %s1814_s23, 512  ;;  %p1816_p2 = scmp.lt.s32.totalorder %s2516_s12, %s1814_s23 }
  0xf1   : > { %p1811_p11 = pnand %p1809_p6, %p3085_p3  ;;  %p1817_p0 = scmp.lt.s32.totalorder %s1815_s29, %s1808_s16 }
  0xf3   : > { %p1812_p8 = pneg %p1811_p11  ;;  %p1818_p10 = por %p1817_p0, %p1816_p2 }
  0xf5   : > { %p1819_p5 = pnand %p1818_p10, %p1812_p8 }
  0xf7   : > { %1822 = shalt.err (!%p1819_p5)
}
  0xf8   : > { %s3088_s2 = scalar_lea.sflag [#allocation10], %s2224_s28  ;;  %s2548_s15 = scalar_lea.hbm %s2991_s7, %s2360_s20 }
  0xf9   : > { %1470 = dma.hbm_to_vmem [thread:$0]  (!%p3086_p7), %s2513_s9, 256, %s2516_s12, %s3088_s2, %s3065_s30, %s3065_s30, %s3064_s13  }
  0xfa   : > { %s535_s18 = scalar_lea.vmem [#allocation14], %s2362_s0  ;;  %s1823_s25 = scalar_lea.hbm %s2548_s15, 128 }
  0xfb   : > { %s546_s4 = sshll.u32 %s535_s18, 4  ;;  %p1824_p3 = scmp.ne.s32.totalorder %s2548_s15, %s1823_s25  ;;  %s547_s4 = int_to_ptr.vmem [resolvable:$true] %s546_s4 }
  0xfc   : > { %p3089_p12 = scmp.ne.s32.totalorder %s3080_s22, 0  ;;  %s1828_s13 = scalar_lea.hbm %s2991_s7, 768 }
  0xfd   : > { %p1829_p7 = scmp.lt.u32.totalorder %s2548_s15, %s2991_s7  ;;  %p1830_p1 = scmp.lt.u32.totalorder %s1828_s13, %s1823_s25 }
  0xfe   : > { %p1826_p9 = pnand %p1824_p3, %p3089_p12  ;;  %p1832_p6 = scmp.lt.u32.totalorder %s1823_s25, %s2548_s15 }
  0xff   : > { %p1831_p13 = por %p1830_p1, %p1829_p7 }
 0x100   : > { %p1827_p4 = pneg %p1826_p9 }
 0x101   : > { %p1833_p11 = por %p1832_p6, %p1831_p13 }
 0x103   : > { %p1834_p8 = pnand %p1833_p11, %p1827_p4 }
 0x105   : > { %1837 = shalt.err (!%p1834_p8)
}
 0x106   : > { %s1838_s20 = scalar_lea.vmem %s547_s4, 128  ;;  %s2060_s0 = smov [#allocation14]  }
 0x107   : > { %p1839_p2 = scmp.ne.s32.totalorder %s547_s4, %s1838_s20  ;;  %s1843_s12 = sshll.u32 %s2060_s0, 4  ;;  %s1844_s12 = int_to_ptr.vmem [resolvable:$false] %s1843_s12 }
 0x108   : > { %s1845_s16 = scalar_lea.vmem %s1844_s12, 256  ;;  %p1846_p5 = scmp.lt.s32.totalorder %s547_s4, %s1844_s12 }
 0x109   : > { %p1841_p0 = pnand %p1839_p2, %p3089_p12  ;;  %p1847_p3 = scmp.lt.s32.totalorder %s1845_s16, %s1838_s20 }
 0x10b   : > { %p1842_p10 = pneg %p1841_p0  ;;  %p1848_p9 = por %p1847_p3, %p1846_p5 }
 0x10d   : > { %p1849_p1 = pnand %p1848_p9, %p1842_p10 }
 0x10f   : > { %1852 = shalt.err (!%p1849_p1)
}
 0x110   : > { %p3090_p7 = scmp.ne.s32.totalorder %s3079_s19, 0  ;;  %s3091_s14 = scalar_lea.sflag [#allocation13], %s2224_s28 }
 0x111   : > { %s3092_s22 = sld [smem:[#allocation30_spill]]  ;;  %s3093_s23 = sld [smem:[#allocation29_spill]] }
 0x112   : > { %s3094_s29 = sld [smem:[#allocation39_spill]]  ;;  %s3095_s2 = sshll.u32 %s2049_s27, 1 }
 0x113   : > { %1476 = dma.hbm_to_vmem [thread:$0]  (!%p3090_p7), %s2548_s15, 128, %s547_s4, %s3091_s14  }
 0x114   : > { %s1346_s11 = sadd.s32 4294967295, %s3095_s2  ;;  %s1348_s6 = sadd.s32 4294967295, %s2321_s10 }
 0x115   : > { %p303_p12 = scmp.gt.s32.totalorder %s1346_s11, 0  ;;  %p307_p4 = scmp.gt.s32.totalorder %s1348_s6, 0 }
 0x116   : > { %s312_s19 = sadd.s32 1, %s2021_s21  ;;  %s577_s25 = sand.u32 1, %s2021_s21  }
 0x117   : > { %s3136_s11 = smov (!%p303_p12, %s1346_s11), 0  ;;  %s3138_s6 = smov (!%p307_p4, %s1348_s6), 0 }
 0x118   : > { %p319_p13 = scmp.ne.s32.totalorder %s2021_s21, %s3092_s22  ;;  %p325_p6 = scmp.ne.s32.totalorder %s3092_s22, %s3093_s23 }
 0x119   : > { %s309_s18 = ssub.s32 %s3136_s11, %s3138_s6  ;;  %p3096_p8 = scmp.eq.s32.totalorder %s2049_s27, 0 }
 0x11a   : > { %p310_p11 = scmp.eq.s32.totalorder %s309_s18, 0  ;;  %p3097_p0 = scmp.eq.s32.totalorder %s3094_s29, 0 }
 0x11b   : > { %p321_p2 = por %p319_p13, %p3096_p8  ;;  %s1375_s4 = sshll.u32 %s577_s25, 3 }
 0x11c   : > { %p2583_p10 = por %p325_p6, %p3097_p0  ;;  %s1378_s10 = sshll.u32 %s3136_s11, 7 }
 0x11d   : > { %s2588_s24 = scalar_select %p310_p11, %s2021_s21, %s312_s19  }
 0x11e   : > { %s3099_s30 = sld [smem:[#allocation47_spill]]  ;;  %s579_s20 = scalar_lea.vmem [#allocation17], %s1375_s4 }
 0x11f   : > { %s590_s0 = sshll.u32 %s579_s20, 4  ;;  %p3100_p5 = scmp.lt.s32.totalorder %s2049_s27, 3  ;;  %s2595_s0 = int_to_ptr.vmem [resolvable:$true] %s590_s0 }
 0x121   : > { %p2599_p3 = pnand %p3100_p5, %p321_p2 }
 0x123   : > { %p1855_p1 = pneg %p2599_p3 }
 0x124   : > { %s2593_s9 = scalar_lea.hbm %s3099_s30, %s1378_s10  ;;  %s1858_s23 = scalar_lea.hbm %s3099_s30, 768 }
 0x125   : > { %s1853_s16 = scalar_lea.hbm %s2593_s9, 128  ;;  %p1859_p4 = scmp.lt.u32.totalorder %s2593_s9, %s3099_s30 }
 0x126   : > { %p1854_p9 = scmp.ne.s32.totalorder %s2593_s9, %s1853_s16  ;;  %p1860_p13 = scmp.lt.u32.totalorder %s1858_s23, %s1853_s16 }
 0x127   : > { %p1862_p11 = scmp.lt.u32.totalorder %s1853_s16, %s2593_s9 }
 0x128   : > { %p1856_p7 = pnand %p1855_p1, %p1854_p9  ;;  %p1861_p6 = por %p1860_p13, %p1859_p4 }
 0x12a   : > { %p1857_p12 = pneg %p1856_p7  ;;  %p1863_p8 = por %p1862_p11, %p1861_p6 }
 0x12c   : > { %p1864_p2 = pnand %p1863_p8, %p1857_p12 }
 0x12e   : > { %1867 = shalt.err (!%p1864_p2)
}
 0x12f   : > { %s1868_s11 = scalar_lea.vmem %s2595_s0, 128  ;;  %s2061_s6 = smov [#allocation17]  }
 0x130   : > { %p1869_p0 = scmp.ne.s32.totalorder %s2595_s0, %s1868_s11  ;;  %s1873_s19 = sshll.u32 %s2061_s6, 4  ;;  %s1874_s19 = int_to_ptr.vmem [resolvable:$false] %s1873_s19 }
 0x131   : > { %s1875_s18 = scalar_lea.vmem %s1874_s19, 256  ;;  %p1876_p7 = scmp.lt.s32.totalorder %s2595_s0, %s1874_s19 }
 0x132   : > { %p1871_p5 = pnand %p1869_p0, %p1855_p1  ;;  %p1877_p4 = scmp.lt.s32.totalorder %s1875_s18, %s1868_s11 }
 0x134   : > { %p1872_p9 = pneg %p1871_p5  ;;  %p1878_p13 = por %p1877_p4, %p1876_p7 }
 0x136   : > { %p1879_p6 = pnand %p1878_p13, %p1872_p9 }
 0x138   : > { %1882 = shalt.err (!%p1879_p6)
}
 0x139   : > { %s3102_s25 = scalar_lea.sflag [#allocation16], %s2224_s28  ;;  %s3103_s4 = sld [smem:[#allocation38_spill]] }
 0x13a   : > { %1482 = dma.hbm_to_vmem [thread:$0]  (!%p2599_p3), %s2593_s9, 128, %s2595_s0, %s3102_s25  }
 0x13f   : > { %p3104_p12 = scmp.ne.s32.totalorder %s3103_s4, 0 }
 0x140   : > { %s3105_s10 = sld [smem:[#allocation34_spill]] (!%p3104_p12)  ;;  %s3106_s17 = sld [smem:[#allocation40_spill]] (!%p3104_p12) }
 0x141   : > { %599 = sbr.rel (%p3104_p12) target bundleno = 582 (0x246), region = 60 }
 0x146   : > { %s2633_s13 = sand.u32 (!%p3104_p12), 1, %s3105_s10   ;;  %p3107_p1 = scmp.ne.s32.totalorder (!%p3104_p12), %s3106_s17, 0 }
 0x147   : > { %s2636_s20 = sshll.u32 (!%p3104_p12), %s2633_s13, 4  ;;  %s602_s16 = scalar_lea.sflag (!%p3104_p12), [#allocation4], %s2633_s13 }
 0x148   : > { %s605_s14 = scalar_lea.vmem [#allocation3], %s2636_s20 }
 0x149   : > { %1980 = dma.done.wait (%p3107_p1), %s602_s16, 256  }
 0x14a   : > { %1982 = vsyncadd (%p3107_p1), %s602_s16, 4294967040  ;;  %s3108_s28 = sld [smem:[#allocation39_spill]]  ;;  %s614_s12 = scalar_lea.vmem [#allocation6], %s2636_s20 }
 0x150   : > { %s610_s9 = sand.u32 1, %s3108_s28  }
 0x151   : > { %s611_s0 = scalar_lea.sflag [#allocation7], %s610_s9 }
 0x152   : > { %1984 = dma.done.wait (%p3107_p1), %s611_s0, 512  }
 0x153   : > { %1986 = vsyncadd (%p3107_p1), %s611_s0, 4294966784  ;;  %s623_s22 = scalar_lea.vmem [#allocation8], %s2636_s20  ;;  %s629_s23 = scalar_lea.sflag [#allocation10], %s610_s9 }
 0x154   : > { %s632_s29 = scalar_lea.vmem [#allocation9], %s2636_s20 }
 0x155   : > { %1988 = dma.done.wait (%p3107_p1), %s629_s23, 512  }
 0x156   : > { %1990 = vsyncadd (%p3107_p1), %s629_s23, 4294966784  ;;  %s3109_s2 = sld [smem:[#allocation31_spill]]  ;;  %s3110_s11 = sld [smem:[#allocation41_spill]] }
 0x157   : > { %s641_s18 = scalar_lea.vmem [#allocation11], %s2636_s20  ;;  %s647_s25 = scalar_lea.sflag [#allocation13], %s610_s9 }
 0x15c   : > { %s648_s6 = sand.u32 1, %s3109_s2   ;;  %p3111_p3 = scmp.ne.s32.totalorder %s3110_s11, 0 }
 0x15d   : > { %s2657_s19 = sshll.u32 %s648_s6, 3 }
 0x15e   : > { %s650_s4 = scalar_lea.vmem [#allocation12], %s2657_s19 }
 0x15f   : > { %1992 = dma.done.wait (%p3111_p3), %s647_s25, 256  }
 0x160   : > { %1994 = vsyncadd (%p3111_p3), %s647_s25, 4294967040  ;;  %s659_s10 = scalar_lea.vmem [#allocation14], %s2657_s19  ;;  %s665_s17 = scalar_lea.sflag [#allocation16], %s610_s9 }
 0x161   : > { %s668_s16 = scalar_lea.vmem [#allocation15], %s2657_s19 }
 0x162   : > { %1996 = dma.done.wait (%p3111_p3), %s665_s17, 128  }
 0x163   : > { %1998 = vsyncadd (%p3111_p3), %s665_s17, 4294967168  ;;  %s3112_s0 = sld [smem:[#allocation30_spill]] }
 0x169   : > { %s675_s23 = sand.u32 1, %s3112_s0  }
 0x16a   : > { %s2672_s2 = sshll.u32 %s675_s23, 3 }
 0x16b   : > { %s677_s6 = scalar_lea.vmem [#allocation17], %s2672_s2 }
 0x16c   : > { %2000 = dma.done.wait (%p2583_p10), %s665_s17, 128  }
 0x16d   : > { %2002 = vsyncadd (%p2583_p10), %s665_s17, 4294967168  ;;  %v798_v0 = vlaneseq  ;;  %s2687_s15 = sld [smem:[#allocation2]]  ;;  %v2691_v4 = vld [vmem:[%s614_s12] sm:$0xff]  ;;  %v2697_v6 = vld [vmem:[%s614_s12 + $0x8] sm:$0xff]  ;;  %p3113_p10 = scmp.eq.s32.totalorder %s3108_s28, 0 }
 0x16e   : > { %v786_v5 = vld [vmem:[%s605_s14] sm:$0xff]  ;;  %s2062_s11 = smov 127   ;;  %v922_v8 = vrot.slane %v2691_v4, 1  ;;  %v923_v9 = vrot.slane %v2697_v6, 1  ;;  %v787_v10 = vld [vmem:[%s605_s14 + $0x8] sm:$0xff]  ;;  %s2063_s14 = smov 1  }
 0x16f   : > { %v2680_v1 = vshrl.u32 %v798_v0, 7  ;;  %s2702_s9 = scalar_select %p3113_p10, 0, 255  ;;  %810 = vrot.lane.b32.xlu1 %v2691_v4, %s2062_s11  ;;  %v2707_v7 = vadd.f32 %v2691_v4, %v786_v5  ;;  %v2715_v11 = vld [vmem:[%s623_s22] sm:$0xff]  ;;  %v2719_v12 = vld [vmem:[%s623_s22 + $0x8] sm:$0xff]  ;;  %v2723_v14 = vadd.f32 %v2697_v6, %v787_v10  ;;  %v2807_v10 = vand.u32 127, %v798_v0 }
 0x170   : > { %v906_v15 = vld [vmem:[%s650_s4] sm:$0xff]  ;;  %v907_v16 = vld [vmem:[%s659_s10] sm:$0xff]  ;;  %v943_v18 = vrot.slane %v2715_v11, 1  ;;  %v944_v19 = vrot.slane %v2719_v12, 1  ;;  %s1391_s22 = sshll.u32 %s3108_s28, 4  ;;  %s760_s19 = scalar_lea.vmem [#allocation19], %s2636_s20 }
 0x171   : > { %v2683_v2 = vadd.s32 8, %v2680_v1  ;;  %vm913_vm0 = vcmp.lt.s32.totalorder %v2680_v1, 7  ;;  %v918_v3 = vsub.s32 0, %v2680_v1  ;;  %vm833_vm1 = vcmp.lt.s32.totalorder %v2680_v1, 1  ;;  %v942_v17 = vld [vmem:[%s668_s16] sm:$0xff]  ;;  %806 = vrot.lane.b32.xlu0 %v2707_v7, %s2062_s11  ;;  %v2758_v33 = vld [vmem:[%s632_s29 + $0x8] sm:$0xff] }
 0x172   : > { %v838_v13 = vsub.s32 7, %v2680_v1  ;;  %v908_v20 = vadd.f32 %v907_v16, %v906_v15  ;;  %v911_v23 = vrot.slane %v2707_v7, 1  ;;  %v946_v24 = vsel %vm913_vm0, %v944_v19, %v943_v18  ;;  %v2746_v28 = vld [vmem:[%s632_s29] sm:$0xff]  ;;  %v1580_v38 = vld [vmem:[%s677_s6] sm:%s2702_s9]  ;;  %s1425_s29 = sshll.u32 %s3108_s28, 8  ;;  %s3114_s25 = sld [smem:[#allocation43_spill]] }
 0x173   : > { %vm910_vm2 = vcmp.eq.s32.totalorder %v2683_v2, 15  ;;  %v929_v21 = vrot.slane %v907_v16, %v918_v3  ;;  %v950_v22 = vrot.slane %v942_v17, %v918_v3  ;;  %v912_v25 = vrot.slane %v2723_v14, 1  ;;  %812 = vrot.lane.b32.xlu1 %v2697_v6, %s2062_s11  ;;  %s785_s12 = smul.f32 9.8, %s2687_s15  ;;  %s3115_s17 = sld [smem:[#allocation49_spill]] }
 0x174   : > { %v924_v26 = vsel %vm913_vm0, %v922_v8, %v923_v9  ;;  %v925_v27 = vsel %vm913_vm0, %v923_v9, %v922_v8  ;;  %v919_v29 = vrot.slane %v908_v20, %v918_v3  ;;  %v945_v32 = vsel %vm913_vm0, %v943_v18, %v944_v19  ;;  %s2875_s0 = scalar_lea.vmem [#allocation18], %s2636_s20  ;;  %s1032_s2 = scalar_lea.sflag [#allocation20], %s2633_s13 }
 0x175   : > { %v952_v30 = vsel %vm910_vm2, %v950_v22, %v946_v24  ;;  %v931_v31 = vsel %vm910_vm2, %v929_v21, %v925_v27  ;;  %v914_v35 = vsel %vm913_vm0, %v911_v23, %v912_v25  ;;  %v915_v36 = vsel %vm913_vm0, %v912_v25, %v911_v23  ;;  %808 = vrot.lane.b32.xlu0 %v2723_v14, %s2062_s11  ;;  %s1045_s23 = sshll.u32 %s2875_s0, 4  ;;  %s2064_s20 = smov [#allocation19]   ;;  %s2917_s23 = int_to_ptr.vmem [resolvable:$true] %s1045_s23 }
 0x176   : > { %v954_v34 = vadd.f32 %v952_v30, %v2719_v12  ;;  %v935_v37 = vmax.f32 %v931_v31, %v2697_v6  ;;  %v921_v39 = vsel %vm910_vm2, %v919_v29, %v915_v36  ;;  %v932_v40 = vmax.f32 %v914_v35, %v2707_v7  ;;  %s1887_s15 = sshll.u32 %s2064_s20, 4  ;;  %s1888_s15 = int_to_ptr.vmem [resolvable:$false] %s1887_s15 }
 0x177   : > { %v953_v41 = vadd.f32 %v945_v32, %v2715_v11  ;;  %v831_v42 = vrot.slane %v2746_v28, 7  ;;  %v933_v43 = vmax.f32 %v921_v39, %v2723_v14  ;;  %v832_v44 = vrot.slane %v2758_v33, 7  ;;  %s1889_s9 = scalar_lea.vmem %s1888_s15, 512 }
 0x178   : > { %v934_v45 = vmax.f32 %v924_v26, %v2691_v4  ;;  %vm829_vm3 = vcmp.eq.s32.totalorder %v2680_v1, 0  ;;  %958 = vrot.lane.b32.xlu1 %v954_v34, %s2063_s14  ;;  %v839_v46 = vrot.slane %v1580_v38, %v838_v13  ;;  %v941_v51 = vsub.f32 %v921_v39, %v2723_v14  ;;  %p3116_p8 = scmp.ne.s32.totalorder %s3114_s25, 0 }
 0x179   : > { %v937_v47 = vsub.f32 %v933_v43, %v935_v37  ;;  %v834_v48 = vsel %vm833_vm1, %v831_v42, %v832_v44  ;;  %v835_v50 = vsel %vm833_vm1, %v832_v44, %v831_v42  ;;  %956 = vrot.lane.b32.xlu0 %v953_v41, %s2063_s14  ;;  %v940_v56 = vsub.f32 %v914_v35, %v2707_v7  ;;  %s2869_s16 = scalar_lea.hbm %s3115_s17, %s1425_s29 }
 0x17a   : > { %v936_v49 = vsub.f32 %v932_v40, %v934_v45  ;;  %v843_v52 = vadd.f32 %v834_v48, %v2758_v33  ;;  %v840_v53 = vsel %vm829_vm3, %v839_v46, %v835_v50  ;;  %v2789_v58 = vstv %s785_s12 }
 0x17b   : > { %v939_v54 = vmax.f32 %v937_v47, 1e-07  ;;  %v842_v57 = vadd.f32 %v840_v53, %v2746_v28  ;;  %vm955_vm4 = vcmp.eq.s32.totalorder %v2807_v10, 0  ;;  %v967_v29 = vmul.f32 %v2758_v33, %v2758_v33 }
 0x17c   : > { %v938_v55 = vmax.f32 %v936_v49, 1e-07  ;;  %846 = vrot.lane.b32.xlu1 %v843_v52, %s2062_s11  ;;  %v966_v35 = vmul.f32 %v2746_v28, %v2746_v28  ;;  %v853_v42 = vmul.f32 %v2719_v12, %v2719_v12  ;;  %v852_v47 = vmul.f32 %v2715_v11, %v2715_v11 }
 0x17d   : > { %v1005_v59 = vmul.f32 %v939_v54, %v2789_v58  ;;  %844 = vrot.lane.b32.xlu0 %v842_v57, %s2062_s11  ;;  %1581 = vlog2.f32 %v939_v54  ;;  %vm903_vm15 = vcmp.ge.s32.totalorder %v2807_v10, 39 }
 0x17e   : > { %v1004_v60 = vmul.f32 %v938_v55, %v2789_v58  ;;  %1583 = vlog2.f32 %v938_v55 }
 0x17f   : > { %v2795_v61 = vmul.f32 %v1005_v59, %v941_v51 }
 0x180   : > { %v2797_v62 = vmul.f32 %v1004_v60, %v940_v56 }
 0x181   : > { %v1009_v3 = vsub.f32 %v2758_v33, %v2795_v61 }
 0x182   : > { %v1008_v63 = vsub.f32 %v2746_v28, %v2797_v62 }
 0x187   : > { %v1582_v19 = vpop.eup %1581 }
 0x188   : > { %v991_v23 = vmul.f32 0.6931472, %v1582_v19  ;;  %v1584_v25 = vpop.eup %1583 }
 0x18a   : > { %v993_v37 = vmul.f32 -2.3333333, %v991_v23 }
 0x18c   : > { %v996_v49 = vmul.f32 1.442695, %v993_v37 }
 0x1e1   : > { %v811_v5 = vpop.permute.xlu1 %810 }
 0x1e2   : > { %v816_v8 = vmax.f32 %v811_v5, %v2691_v4 }
 0x1e3   : > { %v2804_v9 = vpop.permute.xlu0 %806 }
 0x1e4   : > { %v814_v13 = vmax.f32 %v2804_v9, %v2707_v7 }
 0x1e5   : > { %v813_v15 = vpop.permute.xlu1 %812 }
 0x1e6   : > { %v2811_v16 = vsub.f32 %v814_v13, %v816_v8  ;;  %v817_v17 = vmax.f32 %v813_v15, %v2697_v6  ;;  %v795_v15 = vld [vmem:[%s641_s18 + $0x8] sm:$0xff] }
 0x1e7   : > { %v2814_v18 = vpop.permute.xlu0 %808 }
 0x1e8   : > { %v820_v4 = vmax.f32 %v2811_v16, 1e-07  ;;  %v815_v20 = vmax.f32 %v2814_v18, %v2723_v14 }
 0x1ea   : > { %v959_v0 = vpop.permute.xlu1 %958  ;;  %1585 = vlog2.f32 %v820_v4  ;;  %v2822_v21 = vsub.f32 %v815_v20, %v817_v17 }
 0x1eb   : > { %v961_v22 = vsel %vm955_vm4, 0.0, %v959_v0  ;;  %v957_v6 = vpop.permute.xlu0 %956  ;;  %v797_v0 = vmul.f32 %v795_v15, %v795_v15 }
 0x1ec   : > { %v963_v24 = vadd.f32 %v961_v22, %v954_v34  ;;  %v821_v26 = vmax.f32 %v2822_v21, 1e-07  ;;  %v960_v27 = vsel %vm955_vm4, 0.0, %v957_v6  ;;  %v989_v34 = vmul.f32 0.6931472, %v1584_v25  ;;  %v794_v22 = vld [vmem:[%s641_s18] sm:$0xff] }
 0x1ed   : > { %v962_v31 = vadd.f32 %v960_v27, %v953_v41  ;;  %v796_v25 = vmul.f32 %v794_v22, %v794_v22  ;;  %v886_v27 = vmul.f32 %v2789_v58, %v797_v0  ;;  %v822_v21 = vsub.f32 %v2804_v9, %v2707_v7  ;;  %s1061_s18 = sshll.u32 %s760_s19, 4  ;;  %s2871_s18 = int_to_ptr.vmem [resolvable:$true] %s1061_s18 }
 0x1ee   : > { %v965_v30 = vmul.f32 0.25, %v963_v24  ;;  %v847_v32 = vpop.permute.xlu1 %846  ;;  %1587 = vlog2.f32 %v821_v26  ;;  %v992_v50 = vmul.f32 -2.3333333, %v989_v34  ;;  %v894_v0 = vmul.f32 %v2789_v58, %v821_v26  ;;  %s1883_s6 = scalar_lea.vmem %s2871_s18, 256  ;;  %p1890_p5 = scmp.lt.s32.totalorder %s2871_s18, %s1888_s15 }
 0x1ef   : > { %v849_v36 = vadd.f32 %v847_v32, %v843_v52  ;;  %v964_v39 = vmul.f32 0.25, %v962_v31  ;;  %v845_v40 = vpop.permute.xlu0 %844  ;;  %v885_v34 = vmul.f32 %v2789_v58, %v796_v25  ;;  %p1884_p11 = scmp.ne.s32.totalorder %s2871_s18, %s1883_s6  ;;  %p1891_p9 = scmp.lt.s32.totalorder %s1889_s9, %s1883_s6 }
 0x1f0   : > { %v969_v38 = vmul.f32 %v965_v30, %v965_v30  ;;  %v848_v44 = vadd.f32 %v845_v40, %v842_v57  ;;  %v994_v5 = vmul.f32 1.442695, %v992_v50 }
 0x1f1   : > { %v851_v43 = vmul.f32 0.25, %v849_v36  ;;  %v968_v41 = vmul.f32 %v964_v39, %v964_v39  ;;  %p1885_p2 = pnand %p1884_p11, %p3116_p8  ;;  %p1892_p7 = por %p1891_p9, %p1890_p5 }
 0x1f2   : > { %v971_v45 = vadd.f32 %v969_v38, %v967_v29  ;;  %v850_v48 = vmul.f32 0.25, %v848_v44 }
 0x1f3   : > { %v855_v46 = vmul.f32 %v851_v43, %v851_v43  ;;  %v970_v52 = vadd.f32 %v968_v41, %v966_v35  ;;  %p1886_p0 = pneg %p1885_p2 }
 0x1f4   : > { %v973_v51 = vadd.f32 1e-08, %v971_v45  ;;  %v1586_v53 = vpop.eup %1585  ;;  %v854_v55 = vmul.f32 %v850_v48, %v850_v48 }
 0x1f5   : > { %v857_v54 = vadd.f32 %v855_v46, %v853_v42  ;;  %v875_v56 = vmul.f32 0.6931472, %v1586_v53  ;;  %v972_v59 = vadd.f32 1e-08, %v970_v52  ;;  %p1893_p4 = pnand %p1892_p7, %p1886_p0 }
 0x1f6   : > { %1589 = vrsqrt.f32 %v973_v51  ;;  %v856_v60 = vadd.f32 %v854_v55, %v852_v47  ;;  %vm983_vm5 = vcmp.eq.f32.partialorder %v973_v51, inf  ;;  %v986_v31 = vand.u32 2147483648, %v973_v51 }
 0x1f7   : > { %v859_v57 = vadd.f32 1e-08, %v857_v54  ;;  %1591 = vpow2.f32 %v996_v49  ;;  %v878_v17 = vmul.f32 -2.3333333, %v875_v56  ;;  %vm985_vm6 = vcmp.eq.f32.partialorder %v973_v51, 0.0 }
 0x1f8   : > { %v1588_v8 = vpop.eup %1587  ;;  %1593 = vrsqrt.f32 %v972_v59  ;;  %v858_v19 = vadd.f32 1e-08, %v856_v60  ;;  %vm976_vm7 = vcmp.eq.f32.partialorder %v972_v59, inf  ;;  %v979_v40 = vand.u32 2147483648, %v972_v59 }
 0x1f9   : > { %v877_v13 = vmul.f32 0.6931472, %v1588_v8  ;;  %1595 = vrsqrt.f32 %v859_v57  ;;  %v880_v24 = vmul.f32 1.442695, %v878_v17  ;;  %vm978_vm8 = vcmp.eq.f32.partialorder %v972_v59, 0.0 }
 0x1fa   : > { %1597 = vpow2.f32 %v994_v5  ;;  %vm869_vm9 = vcmp.eq.f32.partialorder %v859_v57, inf  ;;  %v872_v45 = vand.u32 2147483648, %v859_v57  ;;  %vm871_vm10 = vcmp.eq.f32.partialorder %v859_v57, 0.0 }
 0x1fb   : > { %v879_v20 = vmul.f32 -2.3333333, %v877_v13  ;;  %1599 = vrsqrt.f32 %v858_v19  ;;  %vm862_vm11 = vcmp.eq.f32.partialorder %v858_v19, inf  ;;  %v865_v54 = vand.u32 2147483648, %v858_v19 }
 0x1fc   : > { %vm864_vm12 = vcmp.eq.f32.partialorder %v858_v19, 0.0 }
 0x1fd   : > { %v882_v23 = vmul.f32 1.442695, %v879_v20 }
 0x1ff   : > { %1601 = vpow2.f32 %v882_v23  ;;  %v823_v23 = vsub.f32 %v2814_v18, %v2723_v14 }
 0x200   : > { %v1590_v6 = vpop.eup %1589  ;;  %1603 = vpow2.f32 %v880_v24  ;;  %v893_v24 = vmul.f32 %v2789_v58, %v820_v4 }
 0x201   : > { %v982_v29 = vmul.f32 %v1590_v6, %v973_v51  ;;  %v1592_v30 = vpop.eup %1591  ;;  %v896_v25 = vmul.f32 %v894_v0, %v823_v23 }
 0x202   : > { %v1594_v32 = vpop.eup %1593  ;;  %v895_v26 = vmul.f32 %v893_v24, %v822_v21 }
 0x203   : > { %v984_v35 = vsel %vm983_vm5, %v973_v51, %v982_v29  ;;  %v1596_v36 = vpop.eup %1595  ;;  %v975_v38 = vmul.f32 %v1594_v32, %v972_v59 }
 0x204   : > { %v987_v37 = vsel %vm985_vm6, %v986_v31, %v984_v35  ;;  %v868_v42 = vmul.f32 %v1596_v36, %v859_v57  ;;  %v1598_v43 = vpop.eup %1597 }
 0x205   : > { %v999_v39 = vmul.f32 %v987_v37, %v886_v27  ;;  %v977_v44 = vsel %vm976_vm7, %v972_v59, %v975_v38  ;;  %v1600_v41 = vpop.eup %1599 }
 0x206   : > { %v980_v47 = vsel %vm978_vm8, %v979_v40, %v977_v44  ;;  %v870_v48 = vsel %vm869_vm9, %v859_v57, %v868_v42  ;;  %v861_v51 = vmul.f32 %v1600_v41, %v858_v19  ;;  %v1015_v57 = vstv %s1391_s22 }
 0x207   : > { %v1001_v46 = vmul.f32 %v1592_v30, %v999_v39  ;;  %v998_v49 = vmul.f32 %v980_v47, %v885_v34  ;;  %v873_v50 = vsel %vm871_vm10, %v872_v45, %v870_v48  ;;  %v1016_v6 = vadd.s32 %v1015_v57, %v2680_v1 }
 0x208   : > { %v888_v53 = vmul.f32 %v886_v27, %v873_v50  ;;  %v863_v60 = vsel %vm862_vm11, %v858_v19, %v861_v51  ;;  %v1017_v19 = vadd.s32 %v1015_v57, %v2683_v2  ;;  %v898_v1 = vsub.f32 %v2719_v12, %v896_v25 }
 0x209   : > { %v1003_v52 = vadd.f32 1.0, %v1001_v46  ;;  %v1602_v55 = vpop.eup %1601  ;;  %v1000_v56 = vmul.f32 %v1598_v43, %v998_v49  ;;  %v866_v5 = vsel %vm864_vm12, %v865_v54, %v863_v60  ;;  %vm1018_vm14 = vcmp.ge.s32.totalorder %v1016_v6, 47 }
 0x20a   : > { %v890_v59 = vmul.f32 %v1602_v55, %v888_v53  ;;  %v887_v13 = vmul.f32 %v885_v34, %v866_v5  ;;  %v1604_v15 = vpop.eup %1603  ;;  %vm1019_vm13 = vcmp.ge.s32.totalorder %v1017_v19, 47  ;;  %v897_v12 = vsub.f32 %v2715_v11, %v895_v26 }
 0x20b   : > { %1605 = vrcp.f32 %v1003_v52  ;;  %v1002_v8 = vadd.f32 1.0, %v1000_v56 }
 0x20c   : > { %v892_v17 = vadd.f32 1.0, %v890_v59  ;;  %v889_v20 = vmul.f32 %v1604_v15, %v887_v13 }
 0x20d   : > { %1607 = vrcp.f32 %v1002_v8 }
 0x20e   : > { %1609 = vrcp.f32 %v892_v17  ;;  %v891_v22 = vadd.f32 1.0, %v889_v20 }
 0x210   : > { %1611 = vrcp.f32 %v891_v22 }
 0x215   : > { %v1606_v27 = vpop.eup %1605 }
 0x216   : > { %v1013_v2 = vmul.f32 %v1606_v27, %v1009_v3 }
 0x217   : > { %v1608_v14 = vpop.eup %1607 }
 0x218   : > { %v1021_v58 = vsel %vm1019_vm13, 0.0, %v1013_v2  ;;  %v1610_v16 = vpop.eup %1609  ;;  %v1012_v7 = vmul.f32 %v1608_v14, %v1008_v63 }
 0x219   : > { %1025 = vst [vmem:[%s760_s19 + $0x8] sm:$0xff] %v1021_v58  ;;  %v902_v33 = vmul.f32 %v1610_v16, %v898_v1 }
 0x21a   : > { %v1020_v28 = vsel %vm1018_vm14, 0.0, %v1012_v7  ;;  %v1612_v61 = vpop.eup %1611 }
 0x21b   : > { %v905_v62 = vsel %vm903_vm15, 0.0, %v902_v33  ;;  %1024 = vst [vmem:[%s760_s19] sm:$0xff] %v1020_v28  ;;  %v901_v63 = vmul.f32 %v1612_v61, %v897_v12 }
 0x21c   : > { %1023 = vst [vmem:[%s2875_s0 + $0x8] sm:$0xff] %v905_v62 }
 0x21d   : > { %1896 = shalt.err (!%p1893_p4)
}
 0x21e   : > { %s1897_s11 = scalar_lea.hbm %s2869_s16, 256  ;;  %s1901_s22 = scalar_lea.hbm %s3115_s17, 768 }
 0x21f   : > { %p1898_p13 = scmp.ne.s32.totalorder %s2869_s16, %s1897_s11  ;;  %p1902_p1 = scmp.lt.u32.totalorder %s2869_s16, %s3115_s17 }
 0x220   : > { %p1903_p3 = scmp.lt.u32.totalorder %s1901_s22, %s1897_s11  ;;  %p1905_p11 = scmp.lt.u32.totalorder %s1897_s11, %s2869_s16 }
 0x221   : > { %p1899_p6 = pnand %p1898_p13, %p3116_p8 }
 0x222   : > { %p1904_p10 = por %p1903_p3, %p1902_p1 }
 0x223   : > { %p1900_p12 = pneg %p1899_p6 }
 0x224   : > { %p1906_p2 = por %p1905_p11, %p1904_p10 }
 0x226   : > { %p1907_p0 = pnand %p1906_p2, %p1900_p12 }
 0x228   : > { %1910 = shalt.err (!%p1907_p0)
}
 0x229   : > { %s2065_s10 = smov 128   ;;  %s2066_s6 = smov 8   ;;  %v904_v11 = vsel %vm903_vm15, 0.0, %v901_v63 }
 0x22a   : > { %1452 = dma.vmem_to_hbm [thread:$0]  (%p3116_p8), %s2871_s18, 256, %s2869_s16, %s1032_s2, %s2065_s10, %s2065_s10, %s2066_s6  }
 0x22b   : > { %s3117_s9 = sld [smem:[#allocation48_spill]]  ;;  %1022 = vst [vmem:[%s2875_s0] sm:$0xff] %v904_v11  ;;  %s1027_s14 = scalar_lea.sflag [#allocation5], %s2633_s13 }
 0x22c   : > { %s1911_s12 = scalar_lea.vmem %s2917_s23, 256  ;;  %s2067_s28 = smov [#allocation18]  }
 0x22d   : > { %p1912_p5 = scmp.ne.s32.totalorder %s2917_s23, %s1911_s12  ;;  %s1915_s18 = sshll.u32 %s2067_s28, 4  ;;  %s1916_s18 = int_to_ptr.vmem [resolvable:$false] %s1915_s18 }
 0x22e   : > { %p1918_p4 = scmp.lt.s32.totalorder %s2917_s23, %s1916_s18 }
 0x22f   : > { %p1913_p9 = pnand %p1912_p5, %p3116_p8 }
 0x231   : > { %s2913_s11 = scalar_lea.hbm %s3117_s9, %s1425_s29  ;;  %p1914_p7 = pneg %p1913_p9 }
 0x232   : > { %s1917_s29 = scalar_lea.vmem %s1916_s18, 512 }
 0x233   : > { %p1919_p13 = scmp.lt.s32.totalorder %s1917_s29, %s1911_s12 }
 0x235   : > { %p1920_p6 = por %p1919_p13, %p1918_p4 }
 0x237   : > { %p1921_p12 = pnand %p1920_p6, %p1914_p7 }
 0x239   : > { %1924 = shalt.err (!%p1921_p12)
}
 0x23a   : > { %s1925_s16 = scalar_lea.hbm %s2913_s11, 256  ;;  %s1929_s22 = scalar_lea.hbm %s3117_s9, 768 }
 0x23b   : > { %p1926_p1 = scmp.ne.s32.totalorder %s2913_s11, %s1925_s16  ;;  %p1930_p11 = scmp.lt.u32.totalorder %s2913_s11, %s3117_s9 }
 0x23c   : > { %p1931_p2 = scmp.lt.u32.totalorder %s1929_s22, %s1925_s16  ;;  %p1933_p5 = scmp.lt.u32.totalorder %s1925_s16, %s2913_s11 }
 0x23d   : > { %p1927_p3 = pnand %p1926_p1, %p3116_p8 }
 0x23e   : > { %p1932_p0 = por %p1931_p2, %p1930_p11 }
 0x23f   : > { %p1928_p10 = pneg %p1927_p3 }
 0x240   : > { %p1934_p9 = por %p1933_p5, %p1932_p0 }
 0x242   : > { %p1935_p7 = pnand %p1934_p9, %p1928_p10 }
 0x244   : > { %1938 = shalt.err (!%p1935_p7)
}
 0x245   : > { %1451 = dma.vmem_to_hbm [thread:$0]  (%p3116_p8), %s2917_s23, 256, %s2913_s11, %s1027_s14, %s2065_s10, %s2065_s10, %s2066_s6  }
 0x246 PF: > { %s3118_s20 = sld [smem:[#allocation33_spill]]  ;;  %s3119_s15 = sld [smem:[#allocation37_spill]] }
 0x247   : > { %p1491_p4 = scmp.ge.s32.totalorder %s2049_s27, 2 }
 0x24c   : > { %s1076_s12 = sand.u32 1, %s3118_s20   ;;  %p3120_p13 = scmp.ne.s32.totalorder %s3119_s15, 0 }
 0x24d   : > { %s1077_s28 = scalar_lea.sflag [#allocation5], %s1076_s12 }
 0x24e   : > { %p1484_p6 = pnand %p1491_p4, %p3120_p13 }
 0x250   : > { %2004 = dma.done.wait (!%p1484_p6), %s1077_s28, 256  }
 0x251   : > { %2006 = vsyncadd (!%p1484_p6), %s1077_s28, 4294967040  ;;  %s1086_s25 = scalar_lea.sflag [#allocation20], %s1076_s12 }
 0x252   : > { %2008 = dma.done.wait (!%p1484_p6), %s1086_s25, 256  }
 0x253   : > { %2010 = vsyncadd (!%p1484_p6), %s1086_s25, 4294967040  ;;  %s3121_s27 = sld [smem:[#allocation35_spill]]  ;;  %s3122_s19 = sld [smem:[#allocation30_spill]] }
 0x254   : > { %s3123_s0 = sld [smem:[#allocation31_spill]]  ;;  %s3124_s22 = sld [smem:[#allocation32_spill]] }
 0x255   : > { %s3125_s23 = sld [smem:[#allocation42_spill]]  ;;  %s3126_s13 = sld [smem:[#allocation34_spill]] }
 0x256   : > { %s3127_s10 = sld [smem:[#allocation36_spill]]  ;;  %s3128_s20 = smov %s2021_s21 }
 0x257   : > { %s3129_s21 = smov %s2588_s24  ;;  %s3131_s25 = smov %s2045_s26 }
 0x259   : > { %p41_p8 = scmp.ge.s32.totalorder %s3121_s27, 5  }
 0x25b   : > { %s3130_s24 = smov %s3126_s13  ;;  %43 = sbr.rel (!%p41_p8) target bundleno = 26 (0x1a), region = 218 }
 0x25c   : > { %s3132_s26 = smov %s3127_s10 }
 0x262   :  { %1091 = vsyncpa [#allocation4], 1 }
 0x263   :  { %1093 = vsyncpa [#allocation4 + $0x1], 1 }
 0x264   :  { %1094 = vsyncpa [#allocation7], 1 }
 0x265   :  { %1096 = vsyncpa [#allocation7 + $0x1], 1 }
 0x266   :  { %1097 = vsyncpa [#allocation10], 1 }
 0x267   :  { %1099 = vsyncpa [#allocation10 + $0x1], 1 }
 0x268   :  { %1100 = vsyncpa [#allocation13], 1 }
 0x269   :  { %1102 = vsyncpa [#allocation13 + $0x1], 1 }
 0x26a   :  { %1103 = vsyncpa [#allocation16], 1 }
 0x26b   :  { %1105 = vsyncpa [#allocation16 + $0x1], 1 }
 0x26c   :  { %1106 = vsyncpa [#allocation5], 1 }
 0x26d   :  { %1108 = vsyncpa [#allocation5 + $0x1], 1 }
 0x26e   :  { %1109 = vsyncpa [#allocation20], 1 }
 0x26f   :  { %1111 = vsyncpa [#allocation20 + $0x1], 1 }

</bundles_post_ra>
